<compile_context>
chip_gen: v7x
topology: tpu7x:2x2x1
jax: 0.10.0
libtpu: 0.0.40
codegen_flags: <defaults>
</compile_context>

<pallas_src>
import functools
import math

import jax
import jax.numpy as jnp
from jax import lax
from jax.experimental import pallas as pl
from jax.experimental.pallas import tpu as pltpu

LEAKY_SLOPE = 0.01  # nn.LeakyReLU() default


def _mrf_fused_kernel(x_ref, w_ref, b_ref, out_ref, *, blocks_meta):
    """Fused MRF forward for one batch row.

    x_ref  : (C, T)                f32   (batch dim squeezed by the BlockSpec)
    w_ref  : (S, C, Kmax*C)        bf16  packed conv weights, w[s, o, k*C + c]
    b_ref  : (C, S)                f32   packed biases
    out_ref: (C, T)                f32
    blocks_meta: tuple of (ksize, (d0, d1, ...)) per ResBlock (flattened dilations).
    """
    C, T = x_ref.shape

    # Single hoisted (1, T) iota; per-tap validity is two (1, T) compares (cheap VPU ops)
    # broadcast into the select -- nothing big stays live across the unrolled chain.
    t_idx = lax.broadcasted_iota(jnp.int32, (1, T), 1)

    step = 0
    for blk_idx, (ksize, dils) in enumerate(blocks_meta):   # static -> unrolled at trace
        center = (ksize - 1) // 2
        cur = x_ref[...]                     # re-read per ResBlock: bounds live ranges
        for d in dils:
            a32 = jnp.where(cur > 0, cur, LEAKY_SLOPE * cur)      # LeakyReLU (f32)
            # im2col: K dilated 'same'-padded shifts stacked along the contraction axis.
            taps = []
            for k in range(ksize):
                off = d * (k - center)
                if off == 0:
                    taps.append(a32.astype(jnp.bfloat16))
                else:
                    rolled = pltpu.roll(a32, shift=(-off) % T, axis=1)   # XLU lane rotate
                    valid = jnp.logical_and(t_idx + off >= 0, t_idx + off < T)  # (1, T)
                    taps.append(jnp.where(valid, rolled, 0.0).astype(jnp.bfloat16))
            cols = jnp.concatenate(taps, axis=0)              # (K*C, T) bf16
            w_s = w_ref[step, :, : ksize * C]                 # (C, K*C) bf16, static slice
            # One fat MXU matmul per step, f32 accumulate.
            y = jnp.dot(w_s, cols, preferred_element_type=jnp.float32)
            cur = cur + y + b_ref[:, step:step + 1]           # (C, 1) bias broadcasts
            step += 1
        # Retire this ResBlock's contribution immediately (MRF sum lives in VMEM).
        if blk_idx == 0:
            out_ref[...] = cur.astype(out_ref.dtype)
        else:
            out_ref[...] = out_ref[...] + cur.astype(out_ref.dtype)


def mrf_forward(x, mrf_params):
    """x: (B, C, T) f32.  mrf_params: list of (ksize, [(w (K,O,C), b (C,1), d), ...])."""
    B, C, T = x.shape

    blocks_meta = []
    w_list, b_list = [], []
    kmax = max(int(k) for k, _ in mrf_params)
    for ksize, block_params in mrf_params:
        dils = []
        for (w, b, d) in block_params:
            # (K, O, C) -> (O, K*C): contraction index k*C + c; pad to Kmax*C lanes.
            wf = jnp.transpose(w, (1, 0, 2)).reshape(C, ksize * C)
            wf = jnp.pad(wf, ((0, 0), (0, (kmax - ksize) * C)))
            w_list.append(wf)
            b_list.append(b.reshape(C))
            dils.append(int(d))
        blocks_meta.append((int(ksize), tuple(dils)))

    w_all = jnp.stack(w_list, axis=0).astype(jnp.bfloat16)   # (S, C, Kmax*C)
    b_all = jnp.stack(b_list, axis=1).astype(jnp.float32)    # (C, S)

    kernel = functools.partial(_mrf_fused_kernel, blocks_meta=tuple(blocks_meta))

    act_spec = pl.BlockSpec((None, C, T), lambda b: (b, 0, 0))   # batch dim squeezed
    w_spec = pl.BlockSpec(w_all.shape, lambda b: (0, 0, 0))      # constant-index, resident
    b_spec = pl.BlockSpec(b_all.shape, lambda b: (0, 0))

    return pl.pallas_call(
        kernel,
        out_shape=jax.ShapeDtypeStruct((B, C, T), x.dtype),
        grid_spec=pltpu.PrefetchScalarGridSpec(
            num_scalar_prefetch=0,
            grid=(B,),
            in_specs=[act_spec, w_spec, b_spec],
            out_specs=act_spec,
        ),
        compiler_params=pltpu.CompilerParams(
            dimension_semantics=("parallel",)),
    )(x, w_all, b_all)


# ----------------------------- pure-JAX reference -----------------------------
def _ref_step(x, w_koc, b, d, ksize):
    a = jnp.where(x > 0, x, LEAKY_SLOPE * x)
    w = jnp.transpose(w_koc, (1, 2, 0))  # (O, C, K) for OIH
    pad = d * (ksize - 1) // 2           # 'same' padding, odd kernel
    y = lax.conv_general_dilated(
        a, w, window_strides=(1,), padding=[(pad, pad)],
        rhs_dilation=(d,), dimension_numbers=("NCH", "OIH", "NCH"))
    return x + y + b.reshape(1, -1, 1)


def mrf_reference(x, mrf_params):
    out = None
    for (ksize, block_params) in mrf_params:
        xi = x
        for (w, b, d) in block_params:
            xi = _ref_step(xi, w, b, d, ksize)
        out = xi if out is None else out + xi
    return out


# ----------------------------- deterministic params -----------------------------
def make_mrf_params(key, hidden, kernels, dilations):
    params = []
    for ksize, dil_groups in zip(kernels, dilations):
        flat_dils = [d for group in dil_groups for d in group]
        block = []
        bound = 1.0 / math.sqrt(hidden * ksize)
        for d in flat_dils:
            key, kw, kb = jax.random.split(key, 3)
            w = jax.random.uniform(kw, (ksize, hidden, hidden), jnp.float32, -bound, bound)
            b = jax.random.uniform(kb, (hidden, 1), jnp.float32, -bound, bound)
            block.append((w, b, d))
        params.append((ksize, block))
    return params


if __name__ == "__main__":
    B, hidden, T = 2, 32, 128
    kernels = [3, 5]
    dilations = [[[1, 3], [5, 1]], [[1], [3]]]  # List[List[List[int]]], flattened per ResBlock

    key = jax.random.PRNGKey(0)
    kx, kp = jax.random.split(key)
    x = jax.random.normal(kx, (B, hidden, T), jnp.float32)
    mrf_params = make_mrf_params(kp, hidden, kernels, dilations)

    out = jax.block_until_ready(mrf_forward(x, mrf_params))
    ref = jax.block_until_ready(mrf_reference(x, mrf_params))

    assert out.shape == (B, hidden, T)
    err = float(jnp.max(jnp.abs(out - ref)))
    # bf16 matmul operands (f32 accumulate / residual chain) -> loosened tolerance.
    assert jnp.allclose(out, ref, atol=5e-2, rtol=5e-2), f"max abs err {err}"
    print("KERNEL_OK")
</pallas_src>

<mosaic_0001>
module attributes {stable_mosaic.version = 11 : i64} {
  func.func @_mrf_fused_kernel(%arg0: i32, %arg1: memref<1x32x128xf32, #tpu.memory_space<vmem>>, %arg2: memref<6x32x160xbf16, #tpu.memory_space<vmem>>, %arg3: memref<32x6xf32, #tpu.memory_space<vmem>>, %arg4: memref<1x32x128xf32, #tpu.memory_space<vmem>>) attributes {dimension_semantics = [#tpu.dimension_semantics<parallel>], iteration_bounds = array<i64: 2>, scalar_prefetch = 0 : i64, scratch_operands = 0 : i64, tpu.core_type = #tpu.core_type<tc>, window_params = [{transform_indices = @transform_0, window_bounds = array<i64: 1, 32, 128>}, {pipeline_mode = #tpu.pipeline_mode<synchronous>, transform_indices = @transform_1, window_bounds = array<i64: 6, 32, 160>}, {pipeline_mode = #tpu.pipeline_mode<synchronous>, transform_indices = @transform_2, window_bounds = array<i64: 32, 6>}, {transform_indices = @transform_3, window_bounds = array<i64: 1, 32, 128>}]} {
    %0 = tpu.iota {dimensions = array<i32: 1>} : vector<1x128xi32>
    %c0 = arith.constant 0 : index
    %c0_0 = arith.constant 0 : index
    %c0_1 = arith.constant 0 : index
    %1 = vector.load %arg1[%c0, %c0_0, %c0_1] : memref<1x32x128xf32, #tpu.memory_space<vmem>>, vector<1x32x128xf32>
    %2 = vector.shape_cast %1 : vector<1x32x128xf32> to vector<32x128xf32>
    %cst = arith.constant 0.000000e+00 : f32
    %3 = vector.broadcast %cst : f32 to vector<32x128xf32>
    %4 = arith.cmpf ogt, %2, %3 : vector<32x128xf32>
    %cst_2 = arith.constant 0.00999999977 : f32
    %5 = vector.broadcast %cst_2 : f32 to vector<32x128xf32>
    %6 = arith.mulf %5, %2 : vector<32x128xf32>
    %7 = arith.select %4, %2, %6 : vector<32x128xi1>, vector<32x128xf32>
    %c1_i32 = arith.constant 1 : i32
    %8 = tpu.dynamic_rotate %7 by %c1_i32 dim 1 : vector<32x128xf32>, i32 -> vector<32x128xf32>
    %c-1_i32 = arith.constant -1 : i32
    %9 = vector.broadcast %c-1_i32 : i32 to vector<1x128xi32>
    %10 = arith.addi %0, %9 : vector<1x128xi32>
    %c0_i32 = arith.constant 0 : i32
    %11 = vector.broadcast %c0_i32 : i32 to vector<1x128xi32>
    %12 = arith.cmpi sge, %10, %11 : vector<1x128xi32>
    %c-1_i32_3 = arith.constant -1 : i32
    %13 = vector.broadcast %c-1_i32_3 : i32 to vector<1x128xi32>
    %14 = arith.addi %0, %13 : vector<1x128xi32>
    %c128_i32 = arith.constant 128 : i32
    %15 = vector.broadcast %c128_i32 : i32 to vector<1x128xi32>
    %16 = arith.cmpi slt, %14, %15 : vector<1x128xi32>
    %17 = arith.andi %12, %16 : vector<1x128xi1>
    %cst_4 = arith.constant 0.000000e+00 : f32
    %18 = vector.shape_cast %17 : vector<1x128xi1> to vector<1x128xi1>
    %19 = vector.broadcast %18 : vector<1x128xi1> to vector<32x128xi1>
    %20 = vector.broadcast %cst_4 : f32 to vector<32x128xf32>
    %21 = arith.select %19, %8, %20 : vector<32x128xi1>, vector<32x128xf32>
    %22 = arith.truncf %21 : vector<32x128xf32> to vector<32x128xbf16>
    %23 = arith.truncf %7 : vector<32x128xf32> to vector<32x128xbf16>
    %c127_i32 = arith.constant 127 : i32
    %24 = tpu.dynamic_rotate %7 by %c127_i32 dim 1 : vector<32x128xf32>, i32 -> vector<32x128xf32>
    %c1_i32_5 = arith.constant 1 : i32
    %25 = vector.broadcast %c1_i32_5 : i32 to vector<1x128xi32>
    %26 = arith.addi %0, %25 : vector<1x128xi32>
    %c0_i32_6 = arith.constant 0 : i32
    %27 = vector.broadcast %c0_i32_6 : i32 to vector<1x128xi32>
    %28 = arith.cmpi sge, %26, %27 : vector<1x128xi32>
    %c1_i32_7 = arith.constant 1 : i32
    %29 = vector.broadcast %c1_i32_7 : i32 to vector<1x128xi32>
    %30 = arith.addi %0, %29 : vector<1x128xi32>
    %c128_i32_8 = arith.constant 128 : i32
    %31 = vector.broadcast %c128_i32_8 : i32 to vector<1x128xi32>
    %32 = arith.cmpi slt, %30, %31 : vector<1x128xi32>
    %33 = arith.andi %28, %32 : vector<1x128xi1>
    %cst_9 = arith.constant 0.000000e+00 : f32
    %34 = vector.shape_cast %33 : vector<1x128xi1> to vector<1x128xi1>
    %35 = vector.broadcast %34 : vector<1x128xi1> to vector<32x128xi1>
    %36 = vector.broadcast %cst_9 : f32 to vector<32x128xf32>
    %37 = arith.select %35, %24, %36 : vector<32x128xi1>, vector<32x128xf32>
    %38 = arith.truncf %37 : vector<32x128xf32> to vector<32x128xbf16>
    %39 = tpu.concatenate %22, %23, %38 in 0 : vector<32x128xbf16>, vector<32x128xbf16>, vector<32x128xbf16> -> vector<96x128xbf16>
    %c0_10 = arith.constant 0 : index
    %c0_11 = arith.constant 0 : index
    %c0_12 = arith.constant 0 : index
    %40 = vector.load %arg2[%c0_10, %c0_11, %c0_12] : memref<6x32x160xbf16, #tpu.memory_space<vmem>>, vector<1x32x96xbf16>
    %41 = vector.shape_cast %40 : vector<1x32x96xbf16> to vector<32x96xbf16>
    %cst_13 = arith.constant dense<0.000000e+00> : vector<32x128xf32>
    %42 = tpu.matmul %41, %39, %cst_13 {dimension_numbers = #tpu.dot_dimension_numbers<[1], [0], [0], [1], [0, 0, 1, 1], [], []>} : vector<32x96xbf16>, vector<96x128xbf16>, vector<32x128xf32> -> vector<32x128xf32>
    %43 = arith.addf %2, %42 : vector<32x128xf32>
    %c0_14 = arith.constant 0 : index
    %c0_15 = arith.constant 0 : index
    %44 = vector.load %arg3[%c0_14, %c0_15] : memref<32x6xf32, #tpu.memory_space<vmem>>, vector<32x1xf32>
    %45 = vector.broadcast %44 : vector<32x1xf32> to vector<32x128xf32>
    %46 = arith.addf %43, %45 : vector<32x128xf32>
    %cst_16 = arith.constant 0.000000e+00 : f32
    %47 = vector.broadcast %cst_16 : f32 to vector<32x128xf32>
    %48 = arith.cmpf ogt, %46, %47 : vector<32x128xf32>
    %cst_17 = arith.constant 0.00999999977 : f32
    %49 = vector.broadcast %cst_17 : f32 to vector<32x128xf32>
    %50 = arith.mulf %49, %46 : vector<32x128xf32>
    %51 = arith.select %48, %46, %50 : vector<32x128xi1>, vector<32x128xf32>
    %c3_i32 = arith.constant 3 : i32
    %52 = tpu.dynamic_rotate %51 by %c3_i32 dim 1 : vector<32x128xf32>, i32 -> vector<32x128xf32>
    %c-3_i32 = arith.constant -3 : i32
    %53 = vector.broadcast %c-3_i32 : i32 to vector<1x128xi32>
    %54 = arith.addi %0, %53 : vector<1x128xi32>
    %c0_i32_18 = arith.constant 0 : i32
    %55 = vector.broadcast %c0_i32_18 : i32 to vector<1x128xi32>
    %56 = arith.cmpi sge, %54, %55 : vector<1x128xi32>
    %c-3_i32_19 = arith.constant -3 : i32
    %57 = vector.broadcast %c-3_i32_19 : i32 to vector<1x128xi32>
    %58 = arith.addi %0, %57 : vector<1x128xi32>
    %c128_i32_20 = arith.constant 128 : i32
    %59 = vector.broadcast %c128_i32_20 : i32 to vector<1x128xi32>
    %60 = arith.cmpi slt, %58, %59 : vector<1x128xi32>
    %61 = arith.andi %56, %60 : vector<1x128xi1>
    %cst_21 = arith.constant 0.000000e+00 : f32
    %62 = vector.shape_cast %61 : vector<1x128xi1> to vector<1x128xi1>
    %63 = vector.broadcast %62 : vector<1x128xi1> to vector<32x128xi1>
    %64 = vector.broadcast %cst_21 : f32 to vector<32x128xf32>
    %65 = arith.select %63, %52, %64 : vector<32x128xi1>, vector<32x128xf32>
    %66 = arith.truncf %65 : vector<32x128xf32> to vector<32x128xbf16>
    %67 = arith.truncf %51 : vector<32x128xf32> to vector<32x128xbf16>
    %c125_i32 = arith.constant 125 : i32
    %68 = tpu.dynamic_rotate %51 by %c125_i32 dim 1 : vector<32x128xf32>, i32 -> vector<32x128xf32>
    %c3_i32_22 = arith.constant 3 : i32
    %69 = vector.broadcast %c3_i32_22 : i32 to vector<1x128xi32>
    %70 = arith.addi %0, %69 : vector<1x128xi32>
    %c0_i32_23 = arith.constant 0 : i32
    %71 = vector.broadcast %c0_i32_23 : i32 to vector<1x128xi32>
    %72 = arith.cmpi sge, %70, %71 : vector<1x128xi32>
    %c3_i32_24 = arith.constant 3 : i32
    %73 = vector.broadcast %c3_i32_24 : i32 to vector<1x128xi32>
    %74 = arith.addi %0, %73 : vector<1x128xi32>
    %c128_i32_25 = arith.constant 128 : i32
    %75 = vector.broadcast %c128_i32_25 : i32 to vector<1x128xi32>
    %76 = arith.cmpi slt, %74, %75 : vector<1x128xi32>
    %77 = arith.andi %72, %76 : vector<1x128xi1>
    %cst_26 = arith.constant 0.000000e+00 : f32
    %78 = vector.shape_cast %77 : vector<1x128xi1> to vector<1x128xi1>
    %79 = vector.broadcast %78 : vector<1x128xi1> to vector<32x128xi1>
    %80 = vector.broadcast %cst_26 : f32 to vector<32x128xf32>
    %81 = arith.select %79, %68, %80 : vector<32x128xi1>, vector<32x128xf32>
    %82 = arith.truncf %81 : vector<32x128xf32> to vector<32x128xbf16>
    %83 = tpu.concatenate %66, %67, %82 in 0 : vector<32x128xbf16>, vector<32x128xbf16>, vector<32x128xbf16> -> vector<96x128xbf16>
    %c1 = arith.constant 1 : index
    %c0_27 = arith.constant 0 : index
    %c0_28 = arith.constant 0 : index
    %84 = vector.load %arg2[%c1, %c0_27, %c0_28] : memref<6x32x160xbf16, #tpu.memory_space<vmem>>, vector<1x32x96xbf16>
    %85 = vector.shape_cast %84 : vector<1x32x96xbf16> to vector<32x96xbf16>
    %cst_29 = arith.constant dense<0.000000e+00> : vector<32x128xf32>
    %86 = tpu.matmul %85, %83, %cst_29 {dimension_numbers = #tpu.dot_dimension_numbers<[1], [0], [0], [1], [0, 0, 1, 1], [], []>} : vector<32x96xbf16>, vector<96x128xbf16>, vector<32x128xf32> -> vector<32x128xf32>
    %87 = arith.addf %46, %86 : vector<32x128xf32>
    %c0_30 = arith.constant 0 : index
    %c1_31 = arith.constant 1 : index
    %88 = vector.load %arg3[%c0_30, %c1_31] : memref<32x6xf32, #tpu.memory_space<vmem>>, vector<32x1xf32>
    %89 = vector.broadcast %88 : vector<32x1xf32> to vector<32x128xf32>
    %90 = arith.addf %87, %89 : vector<32x128xf32>
    %cst_32 = arith.constant 0.000000e+00 : f32
    %91 = vector.broadcast %cst_32 : f32 to vector<32x128xf32>
    %92 = arith.cmpf ogt, %90, %91 : vector<32x128xf32>
    %cst_33 = arith.constant 0.00999999977 : f32
    %93 = vector.broadcast %cst_33 : f32 to vector<32x128xf32>
    %94 = arith.mulf %93, %90 : vector<32x128xf32>
    %95 = arith.select %92, %90, %94 : vector<32x128xi1>, vector<32x128xf32>
    %c5_i32 = arith.constant 5 : i32
    %96 = tpu.dynamic_rotate %95 by %c5_i32 dim 1 : vector<32x128xf32>, i32 -> vector<32x128xf32>
    %c-5_i32 = arith.constant -5 : i32
    %97 = vector.broadcast %c-5_i32 : i32 to vector<1x128xi32>
    %98 = arith.addi %0, %97 : vector<1x128xi32>
    %c0_i32_34 = arith.constant 0 : i32
    %99 = vector.broadcast %c0_i32_34 : i32 to vector<1x128xi32>
    %100 = arith.cmpi sge, %98, %99 : vector<1x128xi32>
    %c-5_i32_35 = arith.constant -5 : i32
    %101 = vector.broadcast %c-5_i32_35 : i32 to vector<1x128xi32>
    %102 = arith.addi %0, %101 : vector<1x128xi32>
    %c128_i32_36 = arith.constant 128 : i32
    %103 = vector.broadcast %c128_i32_36 : i32 to vector<1x128xi32>
    %104 = arith.cmpi slt, %102, %103 : vector<1x128xi32>
    %105 = arith.andi %100, %104 : vector<1x128xi1>
    %cst_37 = arith.constant 0.000000e+00 : f32
    %106 = vector.shape_cast %105 : vector<1x128xi1> to vector<1x128xi1>
    %107 = vector.broadcast %106 : vector<1x128xi1> to vector<32x128xi1>
    %108 = vector.broadcast %cst_37 : f32 to vector<32x128xf32>
    %109 = arith.select %107, %96, %108 : vector<32x128xi1>, vector<32x128xf32>
    %110 = arith.truncf %109 : vector<32x128xf32> to vector<32x128xbf16>
    %111 = arith.truncf %95 : vector<32x128xf32> to vector<32x128xbf16>
    %c123_i32 = arith.constant 123 : i32
    %112 = tpu.dynamic_rotate %95 by %c123_i32 dim 1 : vector<32x128xf32>, i32 -> vector<32x128xf32>
    %c5_i32_38 = arith.constant 5 : i32
    %113 = vector.broadcast %c5_i32_38 : i32 to vector<1x128xi32>
    %114 = arith.addi %0, %113 : vector<1x128xi32>
    %c0_i32_39 = arith.constant 0 : i32
    %115 = vector.broadcast %c0_i32_39 : i32 to vector<1x128xi32>
    %116 = arith.cmpi sge, %114, %115 : vector<1x128xi32>
    %c5_i32_40 = arith.constant 5 : i32
    %117 = vector.broadcast %c5_i32_40 : i32 to vector<1x128xi32>
    %118 = arith.addi %0, %117 : vector<1x128xi32>
    %c128_i32_41 = arith.constant 128 : i32
    %119 = vector.broadcast %c128_i32_41 : i32 to vector<1x128xi32>
    %120 = arith.cmpi slt, %118, %119 : vector<1x128xi32>
    %121 = arith.andi %116, %120 : vector<1x128xi1>
    %cst_42 = arith.constant 0.000000e+00 : f32
    %122 = vector.shape_cast %121 : vector<1x128xi1> to vector<1x128xi1>
    %123 = vector.broadcast %122 : vector<1x128xi1> to vector<32x128xi1>
    %124 = vector.broadcast %cst_42 : f32 to vector<32x128xf32>
    %125 = arith.select %123, %112, %124 : vector<32x128xi1>, vector<32x128xf32>
    %126 = arith.truncf %125 : vector<32x128xf32> to vector<32x128xbf16>
    %127 = tpu.concatenate %110, %111, %126 in 0 : vector<32x128xbf16>, vector<32x128xbf16>, vector<32x128xbf16> -> vector<96x128xbf16>
    %c2 = arith.constant 2 : index
    %c0_43 = arith.constant 0 : index
    %c0_44 = arith.constant 0 : index
    %128 = vector.load %arg2[%c2, %c0_43, %c0_44] : memref<6x32x160xbf16, #tpu.memory_space<vmem>>, vector<1x32x96xbf16>
    %129 = vector.shape_cast %128 : vector<1x32x96xbf16> to vector<32x96xbf16>
    %cst_45 = arith.constant dense<0.000000e+00> : vector<32x128xf32>
    %130 = tpu.matmul %129, %127, %cst_45 {dimension_numbers = #tpu.dot_dimension_numbers<[1], [0], [0], [1], [0, 0, 1, 1], [], []>} : vector<32x96xbf16>, vector<96x128xbf16>, vector<32x128xf32> -> vector<32x128xf32>
    %131 = arith.addf %90, %130 : vector<32x128xf32>
    %c0_46 = arith.constant 0 : index
    %c2_47 = arith.constant 2 : index
    %132 = vector.load %arg3[%c0_46, %c2_47] : memref<32x6xf32, #tpu.memory_space<vmem>>, vector<32x1xf32>
    %133 = vector.broadcast %132 : vector<32x1xf32> to vector<32x128xf32>
    %134 = arith.addf %131, %133 : vector<32x128xf32>
    %cst_48 = arith.constant 0.000000e+00 : f32
    %135 = vector.broadcast %cst_48 : f32 to vector<32x128xf32>
    %136 = arith.cmpf ogt, %134, %135 : vector<32x128xf32>
    %cst_49 = arith.constant 0.00999999977 : f32
    %137 = vector.broadcast %cst_49 : f32 to vector<32x128xf32>
    %138 = arith.mulf %137, %134 : vector<32x128xf32>
    %139 = arith.select %136, %134, %138 : vector<32x128xi1>, vector<32x128xf32>
    %c1_i32_50 = arith.constant 1 : i32
    %140 = tpu.dynamic_rotate %139 by %c1_i32_50 dim 1 : vector<32x128xf32>, i32 -> vector<32x128xf32>
    %c-1_i32_51 = arith.constant -1 : i32
    %141 = vector.broadcast %c-1_i32_51 : i32 to vector<1x128xi32>
    %142 = arith.addi %0, %141 : vector<1x128xi32>
    %c0_i32_52 = arith.constant 0 : i32
    %143 = vector.broadcast %c0_i32_52 : i32 to vector<1x128xi32>
    %144 = arith.cmpi sge, %142, %143 : vector<1x128xi32>
    %c-1_i32_53 = arith.constant -1 : i32
    %145 = vector.broadcast %c-1_i32_53 : i32 to vector<1x128xi32>
    %146 = arith.addi %0, %145 : vector<1x128xi32>
    %c128_i32_54 = arith.constant 128 : i32
    %147 = vector.broadcast %c128_i32_54 : i32 to vector<1x128xi32>
    %148 = arith.cmpi slt, %146, %147 : vector<1x128xi32>
    %149 = arith.andi %144, %148 : vector<1x128xi1>
    %cst_55 = arith.constant 0.000000e+00 : f32
    %150 = vector.shape_cast %149 : vector<1x128xi1> to vector<1x128xi1>
    %151 = vector.broadcast %150 : vector<1x128xi1> to vector<32x128xi1>
    %152 = vector.broadcast %cst_55 : f32 to vector<32x128xf32>
    %153 = arith.select %151, %140, %152 : vector<32x128xi1>, vector<32x128xf32>
    %154 = arith.truncf %153 : vector<32x128xf32> to vector<32x128xbf16>
    %155 = arith.truncf %139 : vector<32x128xf32> to vector<32x128xbf16>
    %c127_i32_56 = arith.constant 127 : i32
    %156 = tpu.dynamic_rotate %139 by %c127_i32_56 dim 1 : vector<32x128xf32>, i32 -> vector<32x128xf32>
    %c1_i32_57 = arith.constant 1 : i32
    %157 = vector.broadcast %c1_i32_57 : i32 to vector<1x128xi32>
    %158 = arith.addi %0, %157 : vector<1x128xi32>
    %c0_i32_58 = arith.constant 0 : i32
    %159 = vector.broadcast %c0_i32_58 : i32 to vector<1x128xi32>
    %160 = arith.cmpi sge, %158, %159 : vector<1x128xi32>
    %c1_i32_59 = arith.constant 1 : i32
    %161 = vector.broadcast %c1_i32_59 : i32 to vector<1x128xi32>
    %162 = arith.addi %0, %161 : vector<1x128xi32>
    %c128_i32_60 = arith.constant 128 : i32
    %163 = vector.broadcast %c128_i32_60 : i32 to vector<1x128xi32>
    %164 = arith.cmpi slt, %162, %163 : vector<1x128xi32>
    %165 = arith.andi %160, %164 : vector<1x128xi1>
    %cst_61 = arith.constant 0.000000e+00 : f32
    %166 = vector.shape_cast %165 : vector<1x128xi1> to vector<1x128xi1>
    %167 = vector.broadcast %166 : vector<1x128xi1> to vector<32x128xi1>
    %168 = vector.broadcast %cst_61 : f32 to vector<32x128xf32>
    %169 = arith.select %167, %156, %168 : vector<32x128xi1>, vector<32x128xf32>
    %170 = arith.truncf %169 : vector<32x128xf32> to vector<32x128xbf16>
    %171 = tpu.concatenate %154, %155, %170 in 0 : vector<32x128xbf16>, vector<32x128xbf16>, vector<32x128xbf16> -> vector<96x128xbf16>
    %c3 = arith.constant 3 : index
    %c0_62 = arith.constant 0 : index
    %c0_63 = arith.constant 0 : index
    %172 = vector.load %arg2[%c3, %c0_62, %c0_63] : memref<6x32x160xbf16, #tpu.memory_space<vmem>>, vector<1x32x96xbf16>
    %173 = vector.shape_cast %172 : vector<1x32x96xbf16> to vector<32x96xbf16>
    %cst_64 = arith.constant dense<0.000000e+00> : vector<32x128xf32>
    %174 = tpu.matmul %173, %171, %cst_64 {dimension_numbers = #tpu.dot_dimension_numbers<[1], [0], [0], [1], [0, 0, 1, 1], [], []>} : vector<32x96xbf16>, vector<96x128xbf16>, vector<32x128xf32> -> vector<32x128xf32>
    %175 = arith.addf %134, %174 : vector<32x128xf32>
    %c0_65 = arith.constant 0 : index
    %c3_66 = arith.constant 3 : index
    %176 = vector.load %arg3[%c0_65, %c3_66] : memref<32x6xf32, #tpu.memory_space<vmem>>, vector<32x1xf32>
    %177 = vector.broadcast %176 : vector<32x1xf32> to vector<32x128xf32>
    %178 = arith.addf %175, %177 : vector<32x128xf32>
    %c0_67 = arith.constant 0 : index
    %c0_68 = arith.constant 0 : index
    %c0_69 = arith.constant 0 : index
    %179 = vector.load %arg4[%c0_67, %c0_68, %c0_69] : memref<1x32x128xf32, #tpu.memory_space<vmem>>, vector<1x32x128xf32>
    %180 = vector.shape_cast %179 : vector<1x32x128xf32> to vector<32x128xf32>
    %181 = vector.shape_cast %178 : vector<32x128xf32> to vector<1x32x128xf32>
    tpu.vector_store %arg4[%c0_67, %c0_68, %c0_69], %181 {strides = array<i32>} : memref<1x32x128xf32, #tpu.memory_space<vmem>>, vector<1x32x128xf32>,
    %c0_70 = arith.constant 0 : index
    %c0_71 = arith.constant 0 : index
    %c0_72 = arith.constant 0 : index
    %182 = vector.load %arg1[%c0_70, %c0_71, %c0_72] : memref<1x32x128xf32, #tpu.memory_space<vmem>>, vector<1x32x128xf32>
    %183 = vector.shape_cast %182 : vector<1x32x128xf32> to vector<32x128xf32>
    %cst_73 = arith.constant 0.000000e+00 : f32
    %184 = vector.broadcast %cst_73 : f32 to vector<32x128xf32>
    %185 = arith.cmpf ogt, %183, %184 : vector<32x128xf32>
    %cst_74 = arith.constant 0.00999999977 : f32
    %186 = vector.broadcast %cst_74 : f32 to vector<32x128xf32>
    %187 = arith.mulf %186, %183 : vector<32x128xf32>
    %188 = arith.select %185, %183, %187 : vector<32x128xi1>, vector<32x128xf32>
    %c2_i32 = arith.constant 2 : i32
    %189 = tpu.dynamic_rotate %188 by %c2_i32 dim 1 : vector<32x128xf32>, i32 -> vector<32x128xf32>
    %c-2_i32 = arith.constant -2 : i32
    %190 = vector.broadcast %c-2_i32 : i32 to vector<1x128xi32>
    %191 = arith.addi %0, %190 : vector<1x128xi32>
    %c0_i32_75 = arith.constant 0 : i32
    %192 = vector.broadcast %c0_i32_75 : i32 to vector<1x128xi32>
    %193 = arith.cmpi sge, %191, %192 : vector<1x128xi32>
    %c-2_i32_76 = arith.constant -2 : i32
    %194 = vector.broadcast %c-2_i32_76 : i32 to vector<1x128xi32>
    %195 = arith.addi %0, %194 : vector<1x128xi32>
    %c128_i32_77 = arith.constant 128 : i32
    %196 = vector.broadcast %c128_i32_77 : i32 to vector<1x128xi32>
    %197 = arith.cmpi slt, %195, %196 : vector<1x128xi32>
    %198 = arith.andi %193, %197 : vector<1x128xi1>
    %cst_78 = arith.constant 0.000000e+00 : f32
    %199 = vector.shape_cast %198 : vector<1x128xi1> to vector<1x128xi1>
    %200 = vector.broadcast %199 : vector<1x128xi1> to vector<32x128xi1>
    %201 = vector.broadcast %cst_78 : f32 to vector<32x128xf32>
    %202 = arith.select %200, %189, %201 : vector<32x128xi1>, vector<32x128xf32>
    %203 = arith.truncf %202 : vector<32x128xf32> to vector<32x128xbf16>
    %c1_i32_79 = arith.constant 1 : i32
    %204 = tpu.dynamic_rotate %188 by %c1_i32_79 dim 1 : vector<32x128xf32>, i32 -> vector<32x128xf32>
    %c-1_i32_80 = arith.constant -1 : i32
    %205 = vector.broadcast %c-1_i32_80 : i32 to vector<1x128xi32>
    %206 = arith.addi %0, %205 : vector<1x128xi32>
    %c0_i32_81 = arith.constant 0 : i32
    %207 = vector.broadcast %c0_i32_81 : i32 to vector<1x128xi32>
    %208 = arith.cmpi sge, %206, %207 : vector<1x128xi32>
    %c-1_i32_82 = arith.constant -1 : i32
    %209 = vector.broadcast %c-1_i32_82 : i32 to vector<1x128xi32>
    %210 = arith.addi %0, %209 : vector<1x128xi32>
    %c128_i32_83 = arith.constant 128 : i32
    %211 = vector.broadcast %c128_i32_83 : i32 to vector<1x128xi32>
    %212 = arith.cmpi slt, %210, %211 : vector<1x128xi32>
    %213 = arith.andi %208, %212 : vector<1x128xi1>
    %cst_84 = arith.constant 0.000000e+00 : f32
    %214 = vector.shape_cast %213 : vector<1x128xi1> to vector<1x128xi1>
    %215 = vector.broadcast %214 : vector<1x128xi1> to vector<32x128xi1>
    %216 = vector.broadcast %cst_84 : f32 to vector<32x128xf32>
    %217 = arith.select %215, %204, %216 : vector<32x128xi1>, vector<32x128xf32>
    %218 = arith.truncf %217 : vector<32x128xf32> to vector<32x128xbf16>
    %219 = arith.truncf %188 : vector<32x128xf32> to vector<32x128xbf16>
    %c127_i32_85 = arith.constant 127 : i32
    %220 = tpu.dynamic_rotate %188 by %c127_i32_85 dim 1 : vector<32x128xf32>, i32 -> vector<32x128xf32>
    %c1_i32_86 = arith.constant 1 : i32
    %221 = vector.broadcast %c1_i32_86 : i32 to vector<1x128xi32>
    %222 = arith.addi %0, %221 : vector<1x128xi32>
    %c0_i32_87 = arith.constant 0 : i32
    %223 = vector.broadcast %c0_i32_87 : i32 to vector<1x128xi32>
    %224 = arith.cmpi sge, %222, %223 : vector<1x128xi32>
    %c1_i32_88 = arith.constant 1 : i32
    %225 = vector.broadcast %c1_i32_88 : i32 to vector<1x128xi32>
    %226 = arith.addi %0, %225 : vector<1x128xi32>
    %c128_i32_89 = arith.constant 128 : i32
    %227 = vector.broadcast %c128_i32_89 : i32 to vector<1x128xi32>
    %228 = arith.cmpi slt, %226, %227 : vector<1x128xi32>
    %229 = arith.andi %224, %228 : vector<1x128xi1>
    %cst_90 = arith.constant 0.000000e+00 : f32
    %230 = vector.shape_cast %229 : vector<1x128xi1> to vector<1x128xi1>
    %231 = vector.broadcast %230 : vector<1x128xi1> to vector<32x128xi1>
    %232 = vector.broadcast %cst_90 : f32 to vector<32x128xf32>
    %233 = arith.select %231, %220, %232 : vector<32x128xi1>, vector<32x128xf32>
    %234 = arith.truncf %233 : vector<32x128xf32> to vector<32x128xbf16>
    %c126_i32 = arith.constant 126 : i32
    %235 = tpu.dynamic_rotate %188 by %c126_i32 dim 1 : vector<32x128xf32>, i32 -> vector<32x128xf32>
    %c2_i32_91 = arith.constant 2 : i32
    %236 = vector.broadcast %c2_i32_91 : i32 to vector<1x128xi32>
    %237 = arith.addi %0, %236 : vector<1x128xi32>
    %c0_i32_92 = arith.constant 0 : i32
    %238 = vector.broadcast %c0_i32_92 : i32 to vector<1x128xi32>
    %239 = arith.cmpi sge, %237, %238 : vector<1x128xi32>
    %c2_i32_93 = arith.constant 2 : i32
    %240 = vector.broadcast %c2_i32_93 : i32 to vector<1x128xi32>
    %241 = arith.addi %0, %240 : vector<1x128xi32>
    %c128_i32_94 = arith.constant 128 : i32
    %242 = vector.broadcast %c128_i32_94 : i32 to vector<1x128xi32>
    %243 = arith.cmpi slt, %241, %242 : vector<1x128xi32>
    %244 = arith.andi %239, %243 : vector<1x128xi1>
    %cst_95 = arith.constant 0.000000e+00 : f32
    %245 = vector.shape_cast %244 : vector<1x128xi1> to vector<1x128xi1>
    %246 = vector.broadcast %245 : vector<1x128xi1> to vector<32x128xi1>
    %247 = vector.broadcast %cst_95 : f32 to vector<32x128xf32>
    %248 = arith.select %246, %235, %247 : vector<32x128xi1>, vector<32x128xf32>
    %249 = arith.truncf %248 : vector<32x128xf32> to vector<32x128xbf16>
    %250 = tpu.concatenate %203, %218, %219, %234, %249 in 0 : vector<32x128xbf16>, vector<32x128xbf16>, vector<32x128xbf16>, vector<32x128xbf16>, vector<32x128xbf16> -> vector<160x128xbf16>
    %c4 = arith.constant 4 : index
    %c0_96 = arith.constant 0 : index
    %c0_97 = arith.constant 0 : index
    %251 = vector.load %arg2[%c4, %c0_96, %c0_97] : memref<6x32x160xbf16, #tpu.memory_space<vmem>>, vector<1x32x160xbf16>
    %252 = vector.shape_cast %251 : vector<1x32x160xbf16> to vector<32x160xbf16>
    %cst_98 = arith.constant dense<0.000000e+00> : vector<32x128xf32>
    %253 = tpu.matmul %252, %250, %cst_98 {dimension_numbers = #tpu.dot_dimension_numbers<[1], [0], [0], [1], [0, 0, 1, 1], [], []>} : vector<32x160xbf16>, vector<160x128xbf16>, vector<32x128xf32> -> vector<32x128xf32>
    %254 = arith.addf %183, %253 : vector<32x128xf32>
    %c0_99 = arith.constant 0 : index
    %c4_100 = arith.constant 4 : index
    %255 = vector.load %arg3[%c0_99, %c4_100] : memref<32x6xf32, #tpu.memory_space<vmem>>, vector<32x1xf32>
    %256 = vector.broadcast %255 : vector<32x1xf32> to vector<32x128xf32>
    %257 = arith.addf %254, %256 : vector<32x128xf32>
    %cst_101 = arith.constant 0.000000e+00 : f32
    %258 = vector.broadcast %cst_101 : f32 to vector<32x128xf32>
    %259 = arith.cmpf ogt, %257, %258 : vector<32x128xf32>
    %cst_102 = arith.constant 0.00999999977 : f32
    %260 = vector.broadcast %cst_102 : f32 to vector<32x128xf32>
    %261 = arith.mulf %260, %257 : vector<32x128xf32>
    %262 = arith.select %259, %257, %261 : vector<32x128xi1>, vector<32x128xf32>
    %c6_i32 = arith.constant 6 : i32
    %263 = tpu.dynamic_rotate %262 by %c6_i32 dim 1 : vector<32x128xf32>, i32 -> vector<32x128xf32>
    %c-6_i32 = arith.constant -6 : i32
    %264 = vector.broadcast %c-6_i32 : i32 to vector<1x128xi32>
    %265 = arith.addi %0, %264 : vector<1x128xi32>
    %c0_i32_103 = arith.constant 0 : i32
    %266 = vector.broadcast %c0_i32_103 : i32 to vector<1x128xi32>
    %267 = arith.cmpi sge, %265, %266 : vector<1x128xi32>
    %c-6_i32_104 = arith.constant -6 : i32
    %268 = vector.broadcast %c-6_i32_104 : i32 to vector<1x128xi32>
    %269 = arith.addi %0, %268 : vector<1x128xi32>
    %c128_i32_105 = arith.constant 128 : i32
    %270 = vector.broadcast %c128_i32_105 : i32 to vector<1x128xi32>
    %271 = arith.cmpi slt, %269, %270 : vector<1x128xi32>
    %272 = arith.andi %267, %271 : vector<1x128xi1>
    %cst_106 = arith.constant 0.000000e+00 : f32
    %273 = vector.shape_cast %272 : vector<1x128xi1> to vector<1x128xi1>
    %274 = vector.broadcast %273 : vector<1x128xi1> to vector<32x128xi1>
    %275 = vector.broadcast %cst_106 : f32 to vector<32x128xf32>
    %276 = arith.select %274, %263, %275 : vector<32x128xi1>, vector<32x128xf32>
    %277 = arith.truncf %276 : vector<32x128xf32> to vector<32x128xbf16>
    %c3_i32_107 = arith.constant 3 : i32
    %278 = tpu.dynamic_rotate %262 by %c3_i32_107 dim 1 : vector<32x128xf32>, i32 -> vector<32x128xf32>
    %c-3_i32_108 = arith.constant -3 : i32
    %279 = vector.broadcast %c-3_i32_108 : i32 to vector<1x128xi32>
    %280 = arith.addi %0, %279 : vector<1x128xi32>
    %c0_i32_109 = arith.constant 0 : i32
    %281 = vector.broadcast %c0_i32_109 : i32 to vector<1x128xi32>
    %282 = arith.cmpi sge, %280, %281 : vector<1x128xi32>
    %c-3_i32_110 = arith.constant -3 : i32
    %283 = vector.broadcast %c-3_i32_110 : i32 to vector<1x128xi32>
    %284 = arith.addi %0, %283 : vector<1x128xi32>
    %c128_i32_111 = arith.constant 128 : i32
    %285 = vector.broadcast %c128_i32_111 : i32 to vector<1x128xi32>
    %286 = arith.cmpi slt, %284, %285 : vector<1x128xi32>
    %287 = arith.andi %282, %286 : vector<1x128xi1>
    %cst_112 = arith.constant 0.000000e+00 : f32
    %288 = vector.shape_cast %287 : vector<1x128xi1> to vector<1x128xi1>
    %289 = vector.broadcast %288 : vector<1x128xi1> to vector<32x128xi1>
    %290 = vector.broadcast %cst_112 : f32 to vector<32x128xf32>
    %291 = arith.select %289, %278, %290 : vector<32x128xi1>, vector<32x128xf32>
    %292 = arith.truncf %291 : vector<32x128xf32> to vector<32x128xbf16>
    %293 = arith.truncf %262 : vector<32x128xf32> to vector<32x128xbf16>
    %c125_i32_113 = arith.constant 125 : i32
    %294 = tpu.dynamic_rotate %262 by %c125_i32_113 dim 1 : vector<32x128xf32>, i32 -> vector<32x128xf32>
    %c3_i32_114 = arith.constant 3 : i32
    %295 = vector.broadcast %c3_i32_114 : i32 to vector<1x128xi32>
    %296 = arith.addi %0, %295 : vector<1x128xi32>
    %c0_i32_115 = arith.constant 0 : i32
    %297 = vector.broadcast %c0_i32_115 : i32 to vector<1x128xi32>
    %298 = arith.cmpi sge, %296, %297 : vector<1x128xi32>
    %c3_i32_116 = arith.constant 3 : i32
    %299 = vector.broadcast %c3_i32_116 : i32 to vector<1x128xi32>
    %300 = arith.addi %0, %299 : vector<1x128xi32>
    %c128_i32_117 = arith.constant 128 : i32
    %301 = vector.broadcast %c128_i32_117 : i32 to vector<1x128xi32>
    %302 = arith.cmpi slt, %300, %301 : vector<1x128xi32>
    %303 = arith.andi %298, %302 : vector<1x128xi1>
    %cst_118 = arith.constant 0.000000e+00 : f32
    %304 = vector.shape_cast %303 : vector<1x128xi1> to vector<1x128xi1>
    %305 = vector.broadcast %304 : vector<1x128xi1> to vector<32x128xi1>
    %306 = vector.broadcast %cst_118 : f32 to vector<32x128xf32>
    %307 = arith.select %305, %294, %306 : vector<32x128xi1>, vector<32x128xf32>
    %308 = arith.truncf %307 : vector<32x128xf32> to vector<32x128xbf16>
    %c122_i32 = arith.constant 122 : i32
    %309 = tpu.dynamic_rotate %262 by %c122_i32 dim 1 : vector<32x128xf32>, i32 -> vector<32x128xf32>
    %c6_i32_119 = arith.constant 6 : i32
    %310 = vector.broadcast %c6_i32_119 : i32 to vector<1x128xi32>
    %311 = arith.addi %0, %310 : vector<1x128xi32>
    %c0_i32_120 = arith.constant 0 : i32
    %312 = vector.broadcast %c0_i32_120 : i32 to vector<1x128xi32>
    %313 = arith.cmpi sge, %311, %312 : vector<1x128xi32>
    %c6_i32_121 = arith.constant 6 : i32
    %314 = vector.broadcast %c6_i32_121 : i32 to vector<1x128xi32>
    %315 = arith.addi %0, %314 : vector<1x128xi32>
    %c128_i32_122 = arith.constant 128 : i32
    %316 = vector.broadcast %c128_i32_122 : i32 to vector<1x128xi32>
    %317 = arith.cmpi slt, %315, %316 : vector<1x128xi32>
    %318 = arith.andi %313, %317 : vector<1x128xi1>
    %cst_123 = arith.constant 0.000000e+00 : f32
    %319 = vector.shape_cast %318 : vector<1x128xi1> to vector<1x128xi1>
    %320 = vector.broadcast %319 : vector<1x128xi1> to vector<32x128xi1>
    %321 = vector.broadcast %cst_123 : f32 to vector<32x128xf32>
    %322 = arith.select %320, %309, %321 : vector<32x128xi1>, vector<32x128xf32>
    %323 = arith.truncf %322 : vector<32x128xf32> to vector<32x128xbf16>
    %324 = tpu.concatenate %277, %292, %293, %308, %323 in 0 : vector<32x128xbf16>, vector<32x128xbf16>, vector<32x128xbf16>, vector<32x128xbf16>, vector<32x128xbf16> -> vector<160x128xbf16>
    %c5 = arith.constant 5 : index
    %c0_124 = arith.constant 0 : index
    %c0_125 = arith.constant 0 : index
    %325 = vector.load %arg2[%c5, %c0_124, %c0_125] : memref<6x32x160xbf16, #tpu.memory_space<vmem>>, vector<1x32x160xbf16>
    %326 = vector.shape_cast %325 : vector<1x32x160xbf16> to vector<32x160xbf16>
    %cst_126 = arith.constant dense<0.000000e+00> : vector<32x128xf32>
    %327 = tpu.matmul %326, %324, %cst_126 {dimension_numbers = #tpu.dot_dimension_numbers<[1], [0], [0], [1], [0, 0, 1, 1], [], []>} : vector<32x160xbf16>, vector<160x128xbf16>, vector<32x128xf32> -> vector<32x128xf32>
    %328 = arith.addf %257, %327 : vector<32x128xf32>
    %c0_127 = arith.constant 0 : index
    %c5_128 = arith.constant 5 : index
    %329 = vector.load %arg3[%c0_127, %c5_128] : memref<32x6xf32, #tpu.memory_space<vmem>>, vector<32x1xf32>
    %330 = vector.broadcast %329 : vector<32x1xf32> to vector<32x128xf32>
    %331 = arith.addf %328, %330 : vector<32x128xf32>
    %c0_129 = arith.constant 0 : index
    %c0_130 = arith.constant 0 : index
    %c0_131 = arith.constant 0 : index
    %332 = vector.load %arg4[%c0_129, %c0_130, %c0_131] : memref<1x32x128xf32, #tpu.memory_space<vmem>>, vector<1x32x128xf32>
    %333 = vector.shape_cast %332 : vector<1x32x128xf32> to vector<32x128xf32>
    %334 = arith.addf %333, %331 : vector<32x128xf32>
    %c0_132 = arith.constant 0 : index
    %c0_133 = arith.constant 0 : index
    %c0_134 = arith.constant 0 : index
    %335 = vector.load %arg4[%c0_132, %c0_133, %c0_134] : memref<1x32x128xf32, #tpu.memory_space<vmem>>, vector<1x32x128xf32>
    %336 = vector.shape_cast %335 : vector<1x32x128xf32> to vector<32x128xf32>
    %337 = vector.shape_cast %334 : vector<32x128xf32> to vector<1x32x128xf32>
    tpu.vector_store %arg4[%c0_132, %c0_133, %c0_134], %337 {strides = array<i32>} : memref<1x32x128xf32, #tpu.memory_space<vmem>>, vector<1x32x128xf32>,
    return
  }
  func.func @transform_0(%arg0: i32) -> (i32, i32, i32) {
    %c0_i32 = arith.constant 0 : i32
    %c0_i32_0 = arith.constant 0 : i32
    %c0_i32_1 = arith.constant 0 : i32
    return %arg0, %c0_i32, %c0_i32_0 : i32, i32, i32
  }
  func.func @transform_1(%arg0: i32) -> (i32, i32, i32) {
    %c0_i32 = arith.constant 0 : i32
    %c0_i32_0 = arith.constant 0 : i32
    %c0_i32_1 = arith.constant 0 : i32
    %c0_i32_2 = arith.constant 0 : i32
    return %c0_i32, %c0_i32_0, %c0_i32_1 : i32, i32, i32
  }
  func.func @transform_2(%arg0: i32) -> (i32, i32) {
    %c0_i32 = arith.constant 0 : i32
    %c0_i32_0 = arith.constant 0 : i32
    %c0_i32_1 = arith.constant 0 : i32
    return %c0_i32, %c0_i32_0 : i32, i32
  }
  func.func @transform_3(%arg0: i32) -> (i32, i32, i32) {
    %c0_i32 = arith.constant 0 : i32
    %c0_i32_0 = arith.constant 0 : i32
    %c0_i32_1 = arith.constant 0 : i32
    return %arg0, %c0_i32, %c0_i32_0 : i32, i32, i32
  }
}

</mosaic_0001>

<bundles_post_ra>
// kernel: tpu_custom_call.1
= control target key start
LH: loop header
LB: loop body
LE: loop exit
PB: predicated region body
PF: predicated region fallthrough
CT: control target
= control target key end

     0   :  { %8 = vsyncpa [#allocation3], 0  ;;  %s2570_s0 = inlined_call_operand.hbm [shape: f32[2,32,128], index: 0, kind: input, shape index: {}]   ;;  %s2571_s1 = inlined_call_operand.hbm [shape: bf16[6,32,160], index: 1, kind: input, shape index: {}]   ;;  %s2572_s2 = inlined_call_operand.vmem [shape: f32[32,6], index: 2, kind: input, shape index: {}]   ;;  %s2573_s3 = inlined_call_operand.hbm [shape: f32[2,32,128], index: 3, kind: output, shape index: {}]  }
   0x1   :  { %10 = vsyncpa [#allocation3 + $0x1], 0 }
   0x2   :  { %11 = vsyncpa [#allocation6], 0 }
   0x3   :  { %12 = vsyncpa [#allocation4], 0 }
   0x4   :  { %14 = vsyncpa [#allocation4 + $0x1], 0  ;;  %s1973_s12 = smov 0   ;;  %s1975_s13 = smov 0  }
   0x5   :  { %s1977_s14 = smov 0   ;;  %s1979_s15 = smov 0  }
   0x6 LB: > { %s1994_s16 = sadd.s32 4294967295, %s1928_s15   ;;  %s1293_s17 = sadd.s32 4294967294, %s1928_s15   ;;  %s1928_s15 = sphi %s1979_s15, %s2603_s15   ;;  %s1924_s14 = sphi %s1977_s14, %s2602_s14   ;;  %s1920_s13 = sphi %s1975_s13, %s2601_s13   ;;  %s1916_s12 = sphi %s1973_s12, %s2600_s12  }
   0x7   : > { %p40_p0 = scmp.ne.s32.totalorder %s1920_s13, %s1916_s12  ;;  %p2574_p1 = scmp.eq.s32.totalorder %s1994_s16, 0 }
   0x8   : > { %p112_p3 = scmp.eq.s32.totalorder %s1293_s17, 1  ;;  %p1294_p5 = scmp.ge.s32.totalorder %s1928_s15, 1 }
   0x9   : > { %p2003_p4 = por %p2574_p1, %p40_p0  ;;  %p119_p7 = scmp.lt.s32.totalorder %s1928_s15, 3 }
   0xa   : > { %p2008_p6 = por %p112_p3, %p40_p0  ;;  %s1930_s21 = smov [#allocation5]  }
   0xb   : > { %s2577_s18 = scalar_select %p2003_p4, 1, 0 }
   0xc   : > { %s2578_s19 = scalar_select %p2008_p6, 1, 0 }
   0xd   : > { %p2013_p8 = pnand %p1294_p5, %p119_p7  ;;  %s131_s22 = sshll.u32 %s1930_s21, 4  ;;  %s2017_s22 = int_to_ptr.vmem [resolvable:$true] %s131_s22 }
   0xe   : > { %s2029_s24 = sadd.s32 1, %s1928_s15   ;;  %s27_s25 = sadd.s32 1, %s1924_s14 }
   0xf   : > { %s2579_s20 = scalar_select %p2013_p8, 1, 0 }
  0x10   : > { %p1539_p9 = pneg %p2013_p8  ;;  %s24_s26 = ssub.s32 %s1928_s15, %s2029_s24 }
  0x11   : > { %s1800_s29 = scalar_lea.hbm %s2571_s1, 3072 }
  0x12   : > { %p2024_p11 = pnand %p1539_p9, %p2574_p1  ;;  %p1801_p12 = scmp.ne.s32.totalorder %s2571_s1, %s1800_s29 }
  0x13   : > { %p1807_p5 = scmp.lt.u32.totalorder %s1800_s29, %s2571_s1 }
  0x14   : > { %p1802_p13 = pneg %p2024_p11 }
  0x16   : > { %p1803_p0 = pnand %p1802_p13, %p1801_p12 }
  0x18   : > { %p1804_p3 = pneg %p1803_p0 }
  0x1a   : > { %p1809_p7 = pnand %p1807_p5, %p1804_p3 }
  0x1c   : > { %1812 = shalt.err (!%p1809_p7)
}
  0x1d   : > { %s1813_s7 = scalar_lea.vmem %s2017_s22, 3072  ;;  %p1821_p2 = scmp.lt.s32.totalorder %s2017_s22, %s2017_s22 }
  0x1e   : > { %p1814_p9 = scmp.ne.s32.totalorder %s2017_s22, %s1813_s7  ;;  %p1822_p6 = scmp.lt.s32.totalorder %s1813_s7, %s1813_s7 }
  0x20   : > { %p1816_p10 = pnand %p1814_p9, %p1802_p13  ;;  %p1823_p4 = por %p1822_p6, %p1821_p2 }
  0x22   : > { %p1817_p1 = pneg %p1816_p10 }
  0x24   : > { %p1824_p8 = pnand %p1823_p4, %p1817_p1 }
  0x26   : > { %1827 = shalt.err (!%p1824_p8)
}
  0x27   : > { %s1931_s8 = smov 128   ;;  %s1932_s9 = smov 8  }
  0x28   : > { %1542 = dma.hbm_to_vmem [thread:$0]  (!%p2024_p11), %s2571_s1, 3072, %s2017_s22, [#allocation6], %s1931_s8, %s1931_s8, %s1932_s9  }
  0x29   : > { %p25_p1 = scmp.eq.s32.totalorder %s24_s26, 0  ;;  %p34_p2 = scmp.ne.s32.totalorder %s1924_s14, %s1920_s13 }
  0x2a   : > { %p35_p4 = scmp.eq.s32.totalorder %s1928_s15, 0  ;;  %p1552_p6 = scmp.lt.s32.totalorder %s1928_s15, 2 }
  0x2b   : > { %s2063_s17 = scalar_select %p25_p1, %s1924_s14, %s27_s25  }
  0x2c   : > { %p36_p8 = por %p35_p4, %p34_p2  ;;  %p2581_p10 = scmp.eq.s32.totalorder %s1994_s16, 1 }
  0x2d   : > { %s148_s23 = sand.u32 1, %s1924_s14   ;;  %s1433_s27 = sshll.u32 %s1928_s15, 9 }
  0x2e   : > { %p2067_p12 = por %p2581_p10, %p34_p2  ;;  %s1297_s28 = sshll.u32 %s148_s23, 5 }
  0x2f   : > { %s2076_s4 = scalar_lea.hbm %s2570_s0, %s1433_s27  ;;  %s152_s22 = scalar_lea.vmem [#allocation2], %s1297_s28 }
  0x30   : > { %s159_s25 = sshll.u32 %s152_s22, 4  ;;  %p2078_p11 = pnand %p1552_p6, %p36_p8  ;;  %s2082_s25 = int_to_ptr.vmem [resolvable:$true] %s159_s25 }
  0x31   : > { %s2084_s5 = scalar_lea.sflag [#allocation3], %s148_s23  ;;  %s1828_s6 = scalar_lea.hbm %s2076_s4, 512 }
  0x32   : > { %p1829_p13 = scmp.ne.s32.totalorder %s2076_s4, %s1828_s6  ;;  %p1830_p0 = pneg %p2078_p11 }
  0x33   : > { %s1833_s11 = scalar_lea.hbm %s2570_s0, 1024  ;;  %p1834_p7 = scmp.lt.u32.totalorder %s2076_s4, %s2570_s0 }
  0x34   : > { %p1831_p3 = pnand %p1830_p0, %p1829_p13  ;;  %p1835_p9 = scmp.lt.u32.totalorder %s1833_s11, %s1828_s6 }
  0x35   : > { %p1837_p2 = scmp.lt.u32.totalorder %s1828_s6, %s2076_s4 }
  0x36   : > { %p1832_p5 = pneg %p1831_p3  ;;  %p1836_p1 = por %p1835_p9, %p1834_p7 }
  0x38   : > { %p1838_p4 = por %p1837_p2, %p1836_p1 }
  0x3a   : > { %p1839_p6 = pnand %p1838_p4, %p1832_p5 }
  0x3c   : > { %1842 = shalt.err (!%p1839_p6)
}
  0x3d   : > { %s1843_s23 = scalar_lea.vmem %s2082_s25, 512  ;;  %s1933_s29 = smov [#allocation2]  }
  0x3e   : > { %p1844_p8 = scmp.ne.s32.totalorder %s2082_s25, %s1843_s23  ;;  %s1848_s30 = sshll.u32 %s1933_s29, 4  ;;  %s1849_s30 = int_to_ptr.vmem [resolvable:$false] %s1848_s30 }
  0x3f   : > { %s1850_s22 = scalar_lea.vmem %s1849_s30, 1024  ;;  %p1851_p3 = scmp.lt.s32.totalorder %s2082_s25, %s1849_s30 }
  0x40   : > { %p1846_p10 = pnand %p1844_p8, %p1830_p0  ;;  %p1852_p7 = scmp.lt.s32.totalorder %s1850_s22, %s1843_s23 }
  0x42   : > { %p1847_p13 = pneg %p1846_p10  ;;  %p1853_p9 = por %p1852_p7, %p1851_p3 }
  0x44   : > { %p1854_p1 = pnand %p1853_p9, %p1847_p13 }
  0x46   : > { %1857 = shalt.err (!%p1854_p1)
}
  0x47   : > { %1546 = dma.hbm_to_vmem [thread:$0]  (!%p2078_p11), %s2076_s4, 512, %s2082_s25, %s2084_s5, %s1931_s8, %s1931_s8, %s1932_s9  }
  0x48   : > { %p2584_p0 = scmp.ne.s32.totalorder %s2579_s20, 0 }
  0x49   : > { %s2118_s6 = sand.u32 (!%p2584_p0), 1, %s1920_s13   ;;  %p2585_p5 = scmp.ne.s32.totalorder (!%p2584_p0), %s2577_s18, 0 }
  0x4a   : > { %171 = sbr.rel (%p2584_p0) target bundleno = 1637 (0x665), region = 32  ;;  %s1301_s7 = sshll.u32 (!%p2584_p0), %s2118_s6, 5 }
  0x4b   : > { %s174_s10 = scalar_lea.sflag (!%p2584_p0), [#allocation3], %s2118_s6  ;;  %s177_s26 = scalar_lea.vmem (!%p2584_p0), [#allocation2], %s1301_s7 }
  0x51   : > { %1903 = dma.done.wait (%p2585_p5), %s174_s10, 512  }
  0x52   : > { %1905 = vsyncadd (%p2585_p5), %s174_s10, 4294966784  ;;  %p2586_p11 = scmp.eq.s32.totalorder %s1994_s16, 0 }
  0x54   : > { %1907 = dma.done.wait (%p2586_p11), [#allocation6], 3072   ;;  %p2587_p2 = pmov %p2586_p11 }
  0x55   : > { %v2132_v0 = vld [vmem:[%s177_s26] sm:$0xff]  ;;  %v2134_v1 = vld [vmem:[%s177_s26 + $0x8] sm:$0xff]  ;;  %v2136_v2 = vld [vmem:[%s177_s26 + $0x10] sm:$0xff]  ;;  %s1934_s18 = smov 1   ;;  %s1935_s20 = smov 127   ;;  %vm279_vm4 = vcmask 785408   ;;  %v205_v22 = vlaneseq }
  0x56   : > { %1909 = vsyncadd (%p2587_p2), [#allocation6], 4294964224  ;;  %vm211_vm0 = vcmp.gt.f32.partialorder %v2132_v0, 0.0  ;;  %vm212_vm1 = vcmp.gt.f32.partialorder %v2134_v1, 0.0  ;;  %v215_v3 = vmul.f32 0.01, %v2132_v0 }
  0x57   : > { %v216_v4 = vmul.f32 0.01, %v2134_v1  ;;  %v2142_v5 = vld [vmem:[%s177_s26 + $0x18] sm:$0xff]  ;;  %vm213_vm2 = vcmp.gt.f32.partialorder %v2136_v2, 0.0  ;;  %v217_v6 = vmul.f32 0.01, %v2136_v2 }
  0x58   : > { %v219_v7 = vsel %vm211_vm0, %v2132_v0, %v215_v3  ;;  %vm214_vm3 = vcmp.gt.f32.partialorder %v2142_v5, 0.0  ;;  %v218_v9 = vmul.f32 0.01, %v2142_v5  ;;  %v1780_v16 = vld [vmem:[#allocation5] ss:$8 sps:$4 sm:$0xff]   ;;  %v1936_v19 = vmov 0  }
  0x59   : > { %v220_v8 = vsel %vm212_vm1, %v2134_v1, %v216_v4  ;;  %v221_v11 = vsel %vm213_vm2, %v2136_v2, %v217_v6  ;;  %1479 = vmatprep.mubr.msk.bf16.mxu0 %vm279_vm4, %v1780_v16  ;;  %v2172_v17 = vld [vmem:[%s2572_s2 + $0x8] sm:$0xff]  ;;  %v2177_v18 = vld [vmem:[%s2572_s2] sm:$0xff]  ;;  %1629 = vset.pattern.permute.xlu1 %v1936_v19  ;;  %v2186_v20 = vld [vmem:[%s2572_s2 + $0x10] sm:$0xff]  ;;  %v2195_v23 = vand.u32 127, %v205_v22  ;;  %s1937_s23 = smov 3   ;;  %s1938_s29 = smov 125  }
  0x5a   : > { %v2150_v10 = vpack.i.bf16 %v220_v8, %v219_v7  ;;  %v2153_v12 = vpack.c.bf16 %v220_v8, %v219_v7  ;;  %v222_v13 = vsel %vm214_vm3, %v2142_v5, %v218_v9  ;;  %1628 = vset.pattern.permute.xlu0 %v1936_v19  ;;  %v2191_v21 = vld [vmem:[%s2572_s2 + $0x18] sm:$0xff]  ;;  %v1782_v22 = vld [vmem:[#allocation5 + $0x20] ss:$8 sps:$4 sm:$0xff]   ;;  %s1940_s30 = smov 5   ;;  %s1941_s22 = smov 123  }
  0x5b   : > { %v2158_v14 = vpack.i.bf16 %v222_v13, %v221_v11  ;;  %v2162_v15 = vpack.c.bf16 %v222_v13, %v221_v11  ;;  %v231_v24 = vadd.s32 4294967295, %v2195_v23  ;;  %v253_v35 = vadd.s32 1, %v2195_v23  ;;  %v1781_v44 = vld [vmem:[#allocation5 + $0x10] ss:$8 sps:$4 sm:$0xff]   ;;  %1495 = vmatprep.mubr.msk.bf16.mxu1 %vm279_vm4, %v1782_v22  ;;  %s1942_s10 = smov 2   ;;  %s1943_s26 = smov 126  }
  0x5c   : > { %1609 = vrot.lane.b32.xlu0 %v2150_v10, %s1934_s18  ;;  %1619 = vrot.lane.b32.xlu1 %v2150_v10, %s1935_s20  ;;  %v1793_v28 = vld [vmem:[#allocation5 + $0x70] ss:$8 sps:$4 sm:$0xff]   ;;  %s203_s8 = scalar_lea.vmem [#allocation7], %s1301_s7  ;;  %s1434_s9 = sshll.u32 %s1994_s16, 9 }
  0x5d   : > { %vm232_vm5 = vcmp.ge.s32.totalorder %v231_v24, 0  ;;  %vm255_vm7 = vcmp.lt.s32.totalorder %v253_v35, 128  ;;  %v1939_v24 = vmov 1   ;;  %s1210_s4 = sshll.u32 %s203_s8, 4  ;;  %s2524_s5 = scalar_lea.hbm %s2573_s3, %s1434_s9  ;;  %s2526_s4 = int_to_ptr.vmem [resolvable:$true] %s1210_s4 }
  0x5e   : > { %vm2198_vm6 = vmpackc.low %vm232_vm5, %vm232_vm5  ;;  %s1197_s11 = scalar_lea.sflag [#allocation4], %s2118_s6  ;;  %s1858_s16 = scalar_lea.vmem %s2526_s4, 512 }
  0x5f   : > { %vm2214_vm8 = vmpackc.low %vm255_vm7, %vm255_vm7  ;;  %p1859_p4 = scmp.ne.s32.totalorder %s2526_s4, %s1858_s16  ;;  %s1950_s27 = smov [#allocation7]  }
  0x60   : > { %1614 = vrot.lane.b32.xlu0 %v2158_v14, %s1934_s18  ;;  %1624 = vrot.lane.b32.xlu1 %v2158_v14, %s1935_s20  ;;  %s1862_s28 = sshll.u32 %s1950_s27, 4  ;;  %s1863_s28 = int_to_ptr.vmem [resolvable:$false] %s1862_s28 }
  0x61   : > { %p1860_p6 = pnand %p1859_p4, %p2067_p12  ;;  %p1865_p10 = scmp.lt.s32.totalorder %s2526_s4, %s1863_s28 }
  0x63   : > { %p1861_p8 = pneg %p1860_p6 }
  0x64   : > { %350 = vperm.xlu1 %1629, %v2172_v17   ;;  %345 = vperm.xlu0 %1628, %v2177_v18  }
  0x68   : > { %355 = vperm.xlu1 %1629, %v2186_v20   ;;  %360 = vperm.xlu0 %1628, %v2191_v21  }
  0x6c   : > { %1650 = vset.pattern.permute.xlu1 %v1939_v24  ;;  %1651 = vset.pattern.permute.xlu0 %v1939_v24 }
  0xce   : > { %v1610_v25 = vpop.permute.xlu0 %1609  ;;  %v1620_v33 = vpop.permute.xlu1 %1619 }
  0xcf   : > { %v1612_v26 = vunpack.i.h.bf16 %v1610_v25  ;;  %v1611_v27 = vunpack.i.l.bf16 %v1610_v25  ;;  %v1622_v36 = vunpack.i.h.bf16 %v1620_v33  ;;  %v1621_v37 = vunpack.i.l.bf16 %v1620_v33 }
  0xd0   : > { %v387_v25 = vadd.s32 4294967293, %v2195_v23 }
  0xd1   : > { %v1307_v29 = vpack.c.bf16 %v1612_v26, %v1611_v27  ;;  %v1313_v39 = vpack.c.bf16 %v1622_v36, %v1621_v37  ;;  %v409_v36 = vadd.s32 3, %v2195_v23 }
  0xd2   : > { %v1615_v30 = vpop.permute.xlu0 %1614  ;;  %v1625_v38 = vpop.permute.xlu1 %1624  ;;  %vm388_vm13 = vcmp.ge.s32.totalorder %v387_v25, 0 }
  0xd3   : > { %v1617_v31 = vunpack.i.h.bf16 %v1615_v30  ;;  %v1616_v32 = vunpack.i.l.bf16 %v1615_v30  ;;  %1467 = vmatprep.subr.msk.bf16.mxu0 %vm2198_vm6, %v1307_v29  ;;  %v1627_v40 = vunpack.i.h.bf16 %v1625_v38  ;;  %v1626_v41 = vunpack.i.l.bf16 %v1625_v38  ;;  %vm2262_vm14 = vmpackc.low %vm388_vm13, %vm388_vm13 }
  0xd4   : > { %1468 = vmatpush3.bf16.msk.msra.mxu0 %vm2198_vm6, %v1307_v29  ;;  %vm411_vm15 = vcmp.lt.s32.totalorder %v409_v36, 128 }
  0xd5   : > { %v1310_v34 = vpack.c.bf16 %v1617_v31, %v1616_v32  ;;  %v1316_v43 = vpack.c.bf16 %v1627_v40, %v1626_v41  ;;  %vm2275_vm0 = vmpackc.low %vm411_vm15, %vm411_vm15  ;;  %vm912_vm15 = vcmask 261120  }
  0xd7   : > { %1469 = vmatprep.subr.msk.bf16.mxu0 %vm2198_vm6, %v1310_v34 }
  0xd8   : > { %1470 = vmatpush3.bf16.msk.msra.mxu0 %vm2198_vm6, %v1310_v34 }
  0xd9   : > { %1471 = vmatprep.subr.bf16.mxu0 %v2153_v12 }
  0xdc   : > { %1472 = vmatpush3.bf16.msra.mxu0 %v2153_v12 }
  0xdd   : > { %1473 = vmatprep.subr.bf16.mxu0 %v2162_v15 }
  0xe0   : > { %1474 = vmatpush3.bf16.msra.mxu0 %v2162_v15 }
  0xe1   : > { %1475 = vmatprep.subr.msk.bf16.mxu0 %vm2214_vm8, %v1313_v39 }
  0xe3   : > { %v351_v45 = vpop.permute.xlu1 %350  ;;  %v346_v46 = vpop.permute.xlu0 %345 }
  0xe4   : > { %1476 = vmatpush3.bf16.msk.msra.mxu0 %vm2214_vm8, %v1313_v39 }
  0xe5   : > { %1477 = vmatprep.subr.msk.bf16.mxu0 %vm2214_vm8, %v1316_v43 }
  0xe7   : > { %v356_v48 = vpop.permute.xlu1 %355  ;;  %v361_v53 = vpop.permute.xlu0 %360 }
  0xe8   : > { %1478 = vmatpush3.bf16.msk.msra.mxu0 %vm2214_vm8, %v1316_v43 }
  0xeb   : > { %1480 = vmatmul.mubr.msk.bf16.vlgmr.msra.gmra.mrb[0].mxu0 %vm279_vm4, %v1781_v44 }
 0x1be   : > { %v1481_v47 = vpop.f32.mrb[0].mxu0 }
 0x1bf   : > { %v337_v49 = vadd.f32 %v1481_v47, %v2136_v2  ;;  %v320_v50 = vpop.f32.mrb[1].mxu0  ;;  %v1783_v47 = vld [vmem:[#allocation5 + $0x30] ss:$8 sps:$4 sm:$0xff]  }
 0x1c0   : > { %v335_v51 = vadd.f32 %v320_v50, %v2132_v0  ;;  %v1482_v52 = vpop.f32.mrb[2].mxu0 }
 0x1c1   : > { %v2230_v54 = vadd.f32 %v356_v48, %v337_v49  ;;  %v338_v55 = vadd.f32 %v1482_v52, %v2142_v5  ;;  %v323_v56 = vpop.f32.mrb[3].mxu0 }
 0x1c2   : > { %v2233_v57 = vadd.f32 %v346_v46, %v335_v51  ;;  %v336_v58 = vadd.f32 %v323_v56, %v2134_v1 }
 0x1c3   : > { %v373_v59 = vmul.f32 0.01, %v2230_v54  ;;  %v2237_v60 = vadd.f32 %v361_v53, %v338_v55  ;;  %vm369_vm9 = vcmp.gt.f32.partialorder %v2230_v54, 0.0 }
 0x1c4   : > { %v371_v61 = vmul.f32 0.01, %v2233_v57  ;;  %v2240_v62 = vadd.f32 %v351_v45, %v336_v58  ;;  %vm367_vm11 = vcmp.gt.f32.partialorder %v2233_v57, 0.0 }
 0x1c5   : > { %v374_v63 = vmul.f32 0.01, %v2237_v60  ;;  %vm370_vm10 = vcmp.gt.f32.partialorder %v2237_v60, 0.0  ;;  %v377_v4 = vsel %vm369_vm9, %v2230_v54, %v373_v59 }
 0x1c6   : > { %v372_v3 = vmul.f32 0.01, %v2240_v62  ;;  %vm368_vm12 = vcmp.gt.f32.partialorder %v2240_v62, 0.0  ;;  %v375_v8 = vsel %vm367_vm11, %v2233_v57, %v371_v61 }
 0x1c7   : > { %v378_v6 = vsel %vm370_vm10, %v2237_v60, %v374_v63 }
 0x1c8   : > { %v1635_v7 = vpack.i.bf16 %v378_v6, %v377_v4  ;;  %v376_v9 = vsel %vm368_vm12, %v2240_v62, %v372_v3  ;;  %v400_v11 = vpack.c.bf16 %v378_v6, %v377_v4 }
 0x1c9   : > { %v1630_v13 = vpack.i.bf16 %v376_v9, %v375_v8  ;;  %v399_v16 = vpack.c.bf16 %v376_v9, %v375_v8 }
 0x1ca   : > { %1636 = vrot.lane.b32.xlu0 %v1635_v7, %s1937_s23 }
 0x1cb   : > { %1631 = vrot.lane.b32.xlu1 %v1630_v13, %s1937_s23 }
 0x1ce   : > { %1646 = vrot.lane.b32.xlu0 %v1635_v7, %s1938_s29 }
 0x1cf   : > { %1641 = vrot.lane.b32.xlu1 %v1630_v13, %s1938_s29 }
 0x1d2   : > { %500 = vperm.xlu0 %1651, %v2172_v17  }
 0x1d3   : > { %496 = vperm.xlu1 %1650, %v2177_v18  }
 0x1d7   : > { %504 = vperm.xlu1 %1650, %v2186_v20  }
 0x1db   : > { %508 = vperm.xlu1 %1650, %v2191_v21  }
 0x23c   : > { %v1637_v26 = vpop.permute.xlu0 %1636 }
 0x23d   : > { %v1632_v27 = vpop.permute.xlu1 %1631  ;;  %v1639_v29 = vunpack.i.h.bf16 %v1637_v26  ;;  %v1638_v30 = vunpack.i.l.bf16 %v1637_v26  ;;  %v1784_v26 = vld [vmem:[#allocation5 + $0x40] ss:$8 sps:$4 sm:$0xff]  }
 0x23e   : > { %v1634_v31 = vunpack.i.h.bf16 %v1632_v27  ;;  %v1633_v32 = vunpack.i.l.bf16 %v1632_v27  ;;  %1511 = vmatprep.mubr.msk.bf16.mxu0 %vm279_vm4, %v1784_v26  ;;  %v1944_v27 = vmov 2  }
 0x23f   : > { %v1326_v35 = vpack.c.bf16 %v1639_v29, %v1638_v30  ;;  %1713 = vset.pattern.permute.xlu1 %v1944_v27  ;;  %1712 = vset.pattern.permute.xlu0 %v1944_v27  ;;  %v1945_v29 = vmov 4  }
 0x240   : > { %v1323_v34 = vpack.c.bf16 %v1634_v31, %v1633_v32  ;;  %v1647_v40 = vpop.permute.xlu0 %1646 }
 0x241   : > { %v1642_v37 = vpop.permute.xlu1 %1641  ;;  %v1649_v43 = vunpack.i.h.bf16 %v1647_v40  ;;  %v1648_v44 = vunpack.i.l.bf16 %v1647_v40 }
 0x242   : > { %1483 = vmatprep.subr.msk.bf16.mxu1 %vm2262_vm14, %v1323_v34  ;;  %v1644_v38 = vunpack.i.h.bf16 %v1642_v37  ;;  %v1643_v39 = vunpack.i.l.bf16 %v1642_v37 }
 0x243   : > { %1484 = vmatpush3.bf16.msk.msra.mxu1 %vm2262_vm14, %v1323_v34  ;;  %v1332_v46 = vpack.c.bf16 %v1649_v43, %v1648_v44 }
 0x244   : > { %1485 = vmatprep.subr.msk.bf16.mxu1 %vm2262_vm14, %v1326_v35  ;;  %v1329_v45 = vpack.c.bf16 %v1644_v38, %v1643_v39  ;;  %v557_v38 = vadd.s32 5, %v2195_v23 }
 0x246   : > { %vm559_vm10 = vcmp.lt.s32.totalorder %v557_v38, 128  ;;  %v1788_v38 = vld [vmem:[#allocation5 + $0x80] ss:$8 sps:$4 sm:$0xff]  }
 0x247   : > { %1486 = vmatpush3.bf16.msk.msra.mxu1 %vm2262_vm14, %v1326_v35  ;;  %vm2338_vm11 = vmpackc.low %vm559_vm10, %vm559_vm10 }
 0x248   : > { %1487 = vmatprep.subr.bf16.mxu1 %v399_v16 }
 0x24b   : > { %1488 = vmatpush3.bf16.msra.mxu1 %v399_v16 }
 0x24c   : > { %1489 = vmatprep.subr.bf16.mxu1 %v400_v11 }
 0x24f   : > { %1490 = vmatpush3.bf16.msra.mxu1 %v400_v11 }
 0x250   : > { %1491 = vmatprep.subr.msk.bf16.mxu1 %vm2275_vm0, %v1329_v45 }
 0x251   : > { %v501_v61 = vpop.permute.xlu0 %500 }
 0x252   : > { %v497_v48 = vpop.permute.xlu1 %496 }
 0x253   : > { %1492 = vmatpush3.bf16.msk.msra.mxu1 %vm2275_vm0, %v1329_v45 }
 0x254   : > { %1493 = vmatprep.subr.msk.bf16.mxu1 %vm2275_vm0, %v1332_v46 }
 0x256   : > { %v505_v49 = vpop.permute.xlu1 %504 }
 0x257   : > { %1494 = vmatpush3.bf16.msk.msra.mxu1 %vm2275_vm0, %v1332_v46 }
 0x25a   : > { %1496 = vmatmul.mubr.msk.bf16.vlgmr.msra.gmra.mrb[0].mxu1 %vm279_vm4, %v1783_v47  ;;  %v509_v63 = vpop.permute.xlu1 %508 }
 0x32d   : > { %v1497_v50 = vpop.f32.mrb[0].mxu1 }
 0x32e   : > { %v493_v51 = vadd.f32 %v1497_v50, %v2230_v54  ;;  %v476_v52 = vpop.f32.mrb[1].mxu1  ;;  %v827_v50 = vadd.s32 4294967294, %v2195_v23 }
 0x32f   : > { %v491_v53 = vadd.f32 %v476_v52, %v2233_v57  ;;  %v1498_v55 = vpop.f32.mrb[2].mxu1 }
 0x330   : > { %v2290_v56 = vadd.f32 %v505_v49, %v493_v51  ;;  %v494_v58 = vadd.f32 %v1498_v55, %v2237_v60  ;;  %v479_v59 = vpop.f32.mrb[3].mxu1  ;;  %vm828_vm12 = vcmp.ge.s32.totalorder %v827_v50, 0 }
 0x331   : > { %v2293_v3 = vadd.f32 %v497_v48, %v491_v53  ;;  %v492_v4 = vadd.f32 %v479_v59, %v2240_v62  ;;  %vm1372_vm13 = vmpackc.low %vm828_vm12, %vm828_vm12 }
 0x332   : > { %v521_v6 = vmul.f32 0.01, %v2290_v56  ;;  %v2297_v7 = vadd.f32 %v509_v63, %v494_v58  ;;  %vm517_vm1 = vcmp.gt.f32.partialorder %v2290_v56, 0.0  ;;  %v1785_v58 = vld [vmem:[#allocation5 + $0x50] ss:$8 sps:$4 sm:$0xff]  }
 0x333   : > { %v519_v54 = vmul.f32 0.01, %v2293_v3  ;;  %v2300_v8 = vadd.f32 %v501_v61, %v492_v4  ;;  %vm515_vm3 = vcmp.gt.f32.partialorder %v2293_v3, 0.0  ;;  %v1786_v4 = vld [vmem:[#allocation5 + $0x84] ss:$8 sps:$4 sm:$0xff]  }
 0x334   : > { %v522_v57 = vmul.f32 0.01, %v2297_v7  ;;  %vm518_vm2 = vcmp.gt.f32.partialorder %v2297_v7, 0.0  ;;  %v525_v62 = vsel %vm517_vm1, %v2290_v56, %v521_v6 }
 0x335   : > { %v520_v60 = vmul.f32 0.01, %v2300_v8  ;;  %vm516_vm5 = vcmp.gt.f32.partialorder %v2300_v8, 0.0  ;;  %v523_v13 = vsel %vm515_vm3, %v2293_v3, %v519_v54 }
 0x336   : > { %v526_v9 = vsel %vm518_vm2, %v2297_v7, %v522_v57 }
 0x337   : > { %v1657_v11 = vpack.i.bf16 %v526_v9, %v525_v62  ;;  %v524_v16 = vsel %vm516_vm5, %v2300_v8, %v520_v60  ;;  %v2312_v22 = vpack.c.bf16 %v526_v9, %v525_v62 }
 0x338   : > { %v1652_v24 = vpack.i.bf16 %v524_v16, %v523_v13  ;;  %v547_v25 = vpack.c.bf16 %v524_v16, %v523_v13 }
 0x339   : > { %1658 = vrot.lane.b32.xlu1 %v1657_v11, %s1940_s30 }
 0x33a   : > { %1653 = vrot.lane.b32.xlu0 %v1652_v24, %s1940_s30 }
 0x33d   : > { %1668 = vrot.lane.b32.xlu1 %v1657_v11, %s1941_s22 }
 0x33e   : > { %1663 = vrot.lane.b32.xlu0 %v1652_v24, %s1941_s22 }
 0x341   : > { %1678 = vrot.lane.b32.xlu1 %v2158_v14, %s1942_s10 }
 0x342   : > { %1673 = vrot.lane.b32.xlu0 %v2150_v10, %s1942_s10 }
 0x345   : > { %1688 = vrot.lane.b32.xlu1 %v2158_v14, %s1934_s18 }
 0x346   : > { %1683 = vrot.lane.b32.xlu0 %v2150_v10, %s1934_s18 }
 0x349   : > { %1698 = vrot.lane.b32.xlu1 %v2158_v14, %s1935_s20 }
 0x34a   : > { %1693 = vrot.lane.b32.xlu0 %v2150_v10, %s1935_s20 }
 0x34d   : > { %1708 = vrot.lane.b32.xlu1 %v2158_v14, %s1943_s26 }
 0x34e   : > { %1703 = vrot.lane.b32.xlu0 %v2150_v10, %s1943_s26  ;;  %v535_v10 = vadd.s32 4294967291, %v2195_v23 }
 0x350   : > { %vm536_vm7 = vcmp.ge.s32.totalorder %v535_v10, 0 }
 0x351   : > { %648 = vperm.xlu1 %1713, %v2172_v17   ;;  %vm1338_vm9 = vmpackc.low %vm536_vm7, %vm536_vm7 }
 0x352   : > { %644 = vperm.xlu0 %1712, %v2177_v18  }
 0x355   : > { %652 = vperm.xlu1 %1713, %v2186_v20  }
 0x356   : > { %656 = vperm.xlu0 %1712, %v2191_v21  }
 0x359   : > { %1714 = vset.pattern.permute.xlu1 %v1945_v29 }
 0x35a   : > { %1715 = vset.pattern.permute.xlu0 %v1945_v29  ;;  %978 = vperm.xlu1 %1714, %v2177_v18  }
 0x35b   : > { %983 = vperm.xlu0 %1715, %v2172_v17  }
 0x35e   : > { %988 = vperm.xlu1 %1714, %v2186_v20  }
 0x362   : > { %993 = vperm.xlu1 %1714, %v2191_v21  }
 0x3ab   : > { %v1659_v14 = vpop.permute.xlu1 %1658 }
 0x3ac   : > { %v1654_v30 = vpop.permute.xlu0 %1653  ;;  %v1661_v31 = vunpack.i.h.bf16 %v1659_v14  ;;  %v1660_v32 = vunpack.i.l.bf16 %v1659_v14 }
 0x3ad   : > { %v1656_v34 = vunpack.i.h.bf16 %v1654_v30  ;;  %v1655_v35 = vunpack.i.l.bf16 %v1654_v30  ;;  %v877_v30 = vadd.s32 2, %v2195_v23 }
 0x3ae   : > { %v1342_v37 = vpack.c.bf16 %v1661_v31, %v1660_v32 }
 0x3af   : > { %v1339_v36 = vpack.c.bf16 %v1656_v34, %v1655_v35  ;;  %v1669_v44 = vpop.permute.xlu1 %1668  ;;  %vm879_vm1 = vcmp.lt.s32.totalorder %v877_v30, 128 }
 0x3b0   : > { %v1664_v39 = vpop.permute.xlu0 %1663  ;;  %v1671_v46 = vunpack.i.h.bf16 %v1669_v44  ;;  %v1670_v47 = vunpack.i.l.bf16 %v1669_v44  ;;  %vm1390_vm2 = vmpackc.low %vm879_vm1, %vm879_vm1 }
 0x3b1   : > { %1499 = vmatprep.subr.msk.bf16.mxu0 %vm1338_vm9, %v1339_v36  ;;  %v1666_v40 = vunpack.i.h.bf16 %v1664_v39  ;;  %v1665_v43 = vunpack.i.l.bf16 %v1664_v39  ;;  %v1789_v39 = vld [vmem:[#allocation5 + $0x94] ss:$8 sps:$4 sm:$0xff]  }
 0x3b2   : > { %1500 = vmatpush3.bf16.msk.msra.mxu0 %vm1338_vm9, %v1339_v36  ;;  %v1348_v51 = vpack.c.bf16 %v1671_v46, %v1670_v47 }
 0x3b3   : > { %1501 = vmatprep.subr.msk.bf16.mxu0 %vm1338_vm9, %v1342_v37  ;;  %v1345_v48 = vpack.c.bf16 %v1666_v40, %v1665_v43  ;;  %v1679_v55 = vpop.permute.xlu1 %1678  ;;  %v1791_v40 = vld [vmem:[#allocation5 + $0x90] ss:$8 sps:$4 sm:$0xff]  }
 0x3b4   : > { %v1674_v49 = vpop.permute.xlu0 %1673  ;;  %v1681_v61 = vunpack.i.h.bf16 %v1679_v55  ;;  %v1680_v63 = vunpack.i.l.bf16 %v1679_v55 }
 0x3b5   : > { %v1676_v52 = vunpack.i.h.bf16 %v1674_v49  ;;  %v1675_v53 = vunpack.i.l.bf16 %v1674_v49 }
 0x3b6   : > { %1502 = vmatpush3.bf16.msk.msra.mxu0 %vm1338_vm9, %v1342_v37  ;;  %v1376_v54 = vpack.c.bf16 %v1681_v61, %v1680_v63 }
 0x3b7   : > { %1503 = vmatprep.subr.bf16.mxu0 %v547_v25  ;;  %v1373_v59 = vpack.c.bf16 %v1676_v52, %v1675_v53  ;;  %v1689_v62 = vpop.permute.xlu1 %1688 }
 0x3b8   : > { %v1684_v6 = vpop.permute.xlu0 %1683  ;;  %v1691_v11 = vunpack.i.h.bf16 %v1689_v62  ;;  %v1690_v13 = vunpack.i.l.bf16 %v1689_v62 }
 0x3b9   : > { %v1686_v57 = vunpack.i.h.bf16 %v1684_v6  ;;  %v1685_v60 = vunpack.i.l.bf16 %v1684_v6 }
 0x3ba   : > { %1504 = vmatpush3.bf16.msra.mxu0 %v547_v25  ;;  %v1382_v16 = vpack.c.bf16 %v1691_v11, %v1690_v13  ;;  %v1792_v13 = vld [vmem:[#allocation5 + $0x60] ss:$8 sps:$4 sm:$0xff]  }
 0x3bb   : > { %1505 = vmatprep.subr.bf16.mxu0 %v2312_v22  ;;  %v1379_v9 = vpack.c.bf16 %v1686_v57, %v1685_v60  ;;  %v1699_v26 = vpop.permute.xlu1 %1698  ;;  %1527 = vmatprep.mubr.msk.bf16.mxu1 %vm279_vm4, %v1792_v13 }
 0x3bc   : > { %v1701_v29 = vunpack.i.h.bf16 %v1699_v26  ;;  %v1700_v10 = vunpack.i.l.bf16 %v1699_v26 }
 0x3be   : > { %1506 = vmatpush3.bf16.msra.mxu0 %v2312_v22  ;;  %v1694_v22 = vpop.permute.xlu0 %1693  ;;  %v1388_v31 = vpack.c.bf16 %v1701_v29, %v1700_v10 }
 0x3bf   : > { %1507 = vmatprep.subr.msk.bf16.mxu0 %vm2338_vm11, %v1345_v48  ;;  %v1696_v24 = vunpack.i.h.bf16 %v1694_v22  ;;  %v1695_v25 = vunpack.i.l.bf16 %v1694_v22  ;;  %v1709_v34 = vpop.permute.xlu1 %1708 }
 0x3c0   : > { %v1710_v36 = vunpack.i.l.bf16 %v1709_v34 }
 0x3c1   : > { %v1385_v27 = vpack.c.bf16 %v1696_v24, %v1695_v25 }
 0x3c2   : > { %1508 = vmatpush3.bf16.msk.msra.mxu0 %vm2338_vm11, %v1345_v48  ;;  %v1704_v14 = vpop.permute.xlu0 %1703 }
 0x3c3   : > { %1509 = vmatprep.subr.msk.bf16.mxu0 %vm2338_vm11, %v1348_v51  ;;  %v1705_v32 = vunpack.i.l.bf16 %v1704_v14 }
 0x3c6   : > { %1510 = vmatpush3.bf16.msk.msra.mxu0 %vm2338_vm11, %v1348_v51 }
 0x3c7   : > { %919 = vmatprep.subr.bf16.mxu0 %v1936_v19 }
 0x3c9   : > { %1512 = vmatmul.mubr.msk.bf16.vlgmr.msra.gmra.mrb[4].mxu0 %vm279_vm4, %v1785_v58 }
 0x3ca   : > { %1374 = vmatpush1.bf16.msk.msra.mxu0 %vm1372_vm13, %v1373_v59  ;;  %1396 = vmatprep.mubr.msk.bf16.mxu0 %vm912_vm15, %v1786_v4 }
 0x3cb   : > { %921 = vmatprep.subr.bf16.mxu0 %v1936_v19 }
 0x3ce   : > { %1377 = vmatpush1.bf16.msk.msra.mxu0 %vm1372_vm13, %v1376_v54 }
 0x3cf   : > { %923 = vmatprep.subr.bf16.mxu0 %v1936_v19 }
 0x3d0   : > { %v649_v43 = vpop.permute.xlu1 %648 }
 0x3d1   : > { %v645_v44 = vpop.permute.xlu0 %644 }
 0x3d2   : > { %1380 = vmatpush1.bf16.msk.msra.mxu0 %vm2198_vm6, %v1379_v9 }
 0x3d3   : > { %925 = vmatprep.subr.bf16.mxu0 %v1936_v19 }
 0x3d4   : > { %v653_v46 = vpop.permute.xlu1 %652 }
 0x3d5   : > { %v657_v51 = vpop.permute.xlu0 %656 }
 0x3d6   : > { %1383 = vmatpush1.bf16.msk.msra.mxu0 %vm2198_vm6, %v1382_v16 }
 0x3d7   : > { %927 = vmatprep.subr.bf16.mxu0 %v1936_v19 }
 0x3d9   : > { %v979_v16 = vpop.permute.xlu1 %978 }
 0x3da   : > { %928 = vmatpush1.bf16.msra.mxu0 %v2153_v12  ;;  %v1706_v12 = vunpack.i.h.bf16 %v1704_v14 }
 0x3db   : > { %929 = vmatprep.subr.bf16.mxu0 %v1936_v19 }
 0x3dc   : > { %v1391_v35 = vpack.c.bf16 %v1706_v12, %v1705_v32 }
 0x3dd   : > { %v989_v12 = vpop.permute.xlu1 %988 }
 0x3de   : > { %930 = vmatpush1.bf16.msra.mxu0 %v2162_v15  ;;  %v1711_v15 = vunpack.i.h.bf16 %v1709_v34 }
 0x3df   : > { %931 = vmatprep.subr.bf16.mxu0 %v1936_v19 }
 0x3e0   : > { %v1394_v37 = vpack.c.bf16 %v1711_v15, %v1710_v36 }
 0x3e2   : > { %1386 = vmatpush1.bf16.msk.msra.mxu0 %vm2214_vm8, %v1385_v27  ;;  %v984_v27 = vpop.permute.xlu0 %983 }
 0x3e3   : > { %933 = vmatprep.subr.bf16.mxu0 %v1936_v19 }
 0x3e6   : > { %1389 = vmatpush1.bf16.msk.msra.mxu0 %vm2214_vm8, %v1388_v31 }
 0x3e7   : > { %935 = vmatprep.subr.bf16.mxu0 %v1936_v19 }
 0x3ea   : > { %1392 = vmatpush1.bf16.msk.msra.mxu0 %vm1390_vm2, %v1391_v35 }
 0x3eb   : > { %937 = vmatprep.subr.bf16.mxu0 %v1936_v19 }
 0x3ee   : > { %1395 = vmatpush1.bf16.msk.msra.mxu0 %vm1390_vm2, %v1394_v37 }
 0x3f1   : > { %952 = vmatmul.mubr.bf16.vlgmr.msra.gmra.mrb[8].mxu0 %v1788_v38 }
 0x3f2   : > { %1397 = vmatprep.mubr.msk.bf16.mxu0 %vm912_vm15, %v1789_v39 }
 0x3f9   : > { %960 = vmatmul.mubr.bf16.gmra.mrb[12].mxu0 %v1791_v40 }
 0x49c   : > { %v1513_v45 = vpop.f32.mrb[4].mxu0 }
 0x49d   : > { %v641_v47 = vadd.f32 %v1513_v45, %v2290_v56  ;;  %v624_v48 = vpop.f32.mrb[5].mxu0 }
 0x49e   : > { %v639_v49 = vadd.f32 %v624_v48, %v2293_v3  ;;  %v1514_v50 = vpop.f32.mrb[6].mxu0 }
 0x49f   : > { %v2378_v52 = vadd.f32 %v653_v46, %v641_v47  ;;  %v642_v53 = vadd.f32 %v1514_v50, %v2297_v7  ;;  %v627_v55 = vpop.f32.mrb[7].mxu0  ;;  %v1948_v50 = vmov 3  }
 0x4a0   : > { %v2381_v58 = vadd.f32 %v645_v44, %v639_v49  ;;  %v640_v59 = vadd.f32 %v627_v55, %v2300_v8  ;;  %v994_v44 = vpop.permute.xlu1 %993  ;;  %1777 = vset.pattern.permute.xlu1 %v1948_v50  ;;  %1776 = vset.pattern.permute.xlu0 %v1948_v50  ;;  %v1796_v50 = vld [vmem:[#allocation5 + $0xa0] ss:$8 sps:$4 sm:$0xff]  }
 0x4a1   : > { %v669_v61 = vmul.f32 0.01, %v2378_v52  ;;  %v2385_v63 = vadd.f32 %v657_v51, %v642_v53  ;;  %vm665_vm3 = vcmp.gt.f32.partialorder %v2378_v52, 0.0  ;;  %v1949_v51 = vmov 5  }
 0x4a2   : > { %v667_v56 = vmul.f32 0.01, %v2381_v58  ;;  %v2388_v4 = vadd.f32 %v649_v43, %v640_v59  ;;  %vm663_vm7 = vcmp.gt.f32.partialorder %v2381_v58, 0.0 }
 0x4a3   : > { %v670_v3 = vmul.f32 0.01, %v2385_v63  ;;  %vm666_vm5 = vcmp.gt.f32.partialorder %v2385_v63, 0.0  ;;  %v673_v8 = vsel %vm665_vm3, %v2378_v52, %v669_v61 }
 0x4a4   : > { %v668_v7 = vmul.f32 0.01, %v2388_v4  ;;  %vm664_vm9 = vcmp.gt.f32.partialorder %v2388_v4, 0.0  ;;  %v671_v57 = vsel %vm663_vm7, %v2381_v58, %v667_v56 }
 0x4a5   : > { %v674_v6 = vsel %vm666_vm5, %v2385_v63, %v670_v3 }
 0x4a6   : > { %v1721_v54 = vpack.i.bf16 %v674_v6, %v673_v8  ;;  %v672_v60 = vsel %vm664_vm9, %v2388_v4, %v668_v7  ;;  %v2400_v62 = vpack.c.bf16 %v674_v6, %v673_v8 }
 0x4a7   : > { %v1716_v9 = vpack.i.bf16 %v672_v60, %v671_v57  ;;  %v2402_v11 = vpack.c.bf16 %v672_v60, %v671_v57 }
 0x4a8   : > { %1722 = vrot.lane.b32.xlu1 %v1721_v54, %s1934_s18 }
 0x4a9   : > { %1717 = vrot.lane.b32.xlu0 %v1716_v9, %s1934_s18  ;;  %s1946_s18 = smov 6  }
 0x4ac   : > { %1732 = vrot.lane.b32.xlu1 %v1721_v54, %s1935_s20 }
 0x4ad   : > { %1727 = vrot.lane.b32.xlu0 %v1716_v9, %s1935_s20  ;;  %s1947_s20 = smov 122   ;;  %v1794_v9 = vld [vmem:[#allocation5 + $0xa4] ss:$8 sps:$4 sm:$0xff]  }
 0x4c4   : > { %v953_v22 = vpop.f32.mrb[8].mxu0 }
 0x4c5   : > { %v968_v24 = vadd.f32 %v953_v22, %v2132_v0  ;;  %v955_v25 = vpop.f32.mrb[9].mxu0 }
 0x4c6   : > { %v956_v26 = vpop.f32.mrb[10].mxu0 }
 0x4c7   : > { %v2410_v29 = vadd.f32 %v979_v16, %v968_v24  ;;  %v969_v10 = vadd.f32 %v956_v26, %v2134_v1  ;;  %v958_v14 = vpop.f32.mrb[11].mxu0 }
 0x4c9   : > { %v1004_v30 = vmul.f32 0.01, %v2410_v29  ;;  %v2414_v31 = vadd.f32 %v984_v27, %v969_v10  ;;  %vm1000_vm10 = vcmp.gt.f32.partialorder %v2410_v29, 0.0 }
 0x4cb   : > { %vm1001_vm11 = vcmp.gt.f32.partialorder %v2414_v31, 0.0  ;;  %v1005_v32 = vmul.f32 0.01, %v2414_v31  ;;  %v2424_v1 = vsel %vm1000_vm10, %v2410_v29, %v1004_v30 }
 0x4cc   : > { %v961_v0 = vpop.f32.mrb[12].mxu0 }
 0x4cd   : > { %v2420_v34 = vsel %vm1001_vm11, %v2414_v31, %v1005_v32  ;;  %v970_v35 = vadd.f32 %v961_v0, %v2136_v2  ;;  %v963_v15 = vpop.f32.mrb[13].mxu0 }
 0x4ce   : > { %v964_v36 = vpop.f32.mrb[14].mxu0  ;;  %v1736_v37 = vpack.i.bf16 %v2420_v34, %v2424_v1  ;;  %v1046_v38 = vpack.c.bf16 %v2420_v34, %v2424_v1 }
 0x4cf   : > { %v2430_v39 = vadd.f32 %v989_v12, %v970_v35  ;;  %v971_v40 = vadd.f32 %v964_v36, %v2142_v5  ;;  %v966_v43 = vpop.f32.mrb[15].mxu0 }
 0x4d0   : > { %1737 = vrot.lane.b32.xlu0 %v1736_v37, %s1946_s18 }
 0x4d1   : > { %v1006_v2 = vmul.f32 0.01, %v2430_v39  ;;  %v2434_v45 = vadd.f32 %v994_v44, %v971_v40  ;;  %vm1002_vm12 = vcmp.gt.f32.partialorder %v2430_v39, 0.0 }
 0x4d3   : > { %vm1003_vm13 = vcmp.gt.f32.partialorder %v2434_v45, 0.0  ;;  %v1007_v46 = vmul.f32 0.01, %v2434_v45  ;;  %v2441_v47 = vsel %vm1002_vm12, %v2430_v39, %v1006_v2  ;;  %v1070_v2 = vadd.s32 6, %v2195_v23 }
 0x4d4   : > { %1747 = vrot.lane.b32.xlu0 %v1736_v37, %s1937_s23 }
 0x4d5   : > { %v2444_v5 = vsel %vm1003_vm13, %v2434_v45, %v1007_v46 }
 0x4d6   : > { %v1741_v48 = vpack.i.bf16 %v2444_v5, %v2441_v47  ;;  %v1047_v49 = vpack.c.bf16 %v2444_v5, %v2441_v47 }
 0x4d8   : > { %1742 = vrot.lane.b32.xlu1 %v1741_v48, %s1946_s18  ;;  %1757 = vrot.lane.b32.xlu0 %v1736_v37, %s1938_s29 }
 0x4dc   : > { %1752 = vrot.lane.b32.xlu1 %v1741_v48, %s1937_s23  ;;  %1767 = vrot.lane.b32.xlu0 %v1736_v37, %s1947_s20  ;;  %s1864_s23 = scalar_lea.vmem %s1863_s28, 1024 }
 0x4dd   : > { %p1866_p13 = scmp.lt.s32.totalorder %s1864_s23, %s1858_s16 }
 0x4df   : > { %p1867_p3 = por %p1866_p13, %p1865_p10 }
 0x4e0   : > { %1762 = vrot.lane.b32.xlu1 %v1741_v48, %s1938_s29  ;;  %780 = vperm.xlu0 %1776, %v2177_v18  }
 0x4e1   : > { %p1868_p7 = pnand %p1867_p3, %p1861_p8 }
 0x4e4   : > { %1772 = vrot.lane.b32.xlu1 %v1741_v48, %s1947_s20  ;;  %792 = vperm.xlu0 %1776, %v2191_v21  }
 0x4e8   : > { %784 = vperm.xlu1 %1777, %v2172_v17   ;;  %1779 = vset.pattern.permute.xlu0 %v1949_v51 }
 0x4e9   : > { %1169 = vperm.xlu0 %1779, %v2172_v17  }
 0x4ec   : > { %788 = vperm.xlu1 %1777, %v2186_v20  }
 0x4f0   : > { %1778 = vset.pattern.permute.xlu1 %v1949_v51  ;;  %v1797_v51 = vld [vmem:[#allocation5 + $0xb4] ss:$8 sps:$4 sm:$0xff]  }
 0x4f1   : > { %1165 = vperm.xlu1 %1778, %v2177_v18  }
 0x4f5   : > { %1173 = vperm.xlu1 %1778, %v2186_v20  }
 0x4f9   : > { %1177 = vperm.xlu1 %1778, %v2191_v21  }
 0x51a   : > { %v1723_v53 = vpop.permute.xlu1 %1722 }
 0x51b   : > { %v1718_v55 = vpop.permute.xlu0 %1717  ;;  %v1725_v59 = vunpack.i.h.bf16 %v1723_v53  ;;  %v1724_v61 = vunpack.i.l.bf16 %v1723_v53  ;;  %v1799_v53 = vld [vmem:[#allocation5 + $0xb0] ss:$8 sps:$4 sm:$0xff]  }
 0x51c   : > { %v1720_v56 = vunpack.i.h.bf16 %v1718_v55  ;;  %v1719_v3 = vunpack.i.l.bf16 %v1718_v55 }
 0x51d   : > { %v1358_v8 = vpack.c.bf16 %v1725_v59, %v1724_v61 }
 0x51e   : > { %v1355_v7 = vpack.c.bf16 %v1720_v56, %v1719_v3  ;;  %v1733_v21 = vpop.permute.xlu1 %1732 }
 0x51f   : > { %v1728_v17 = vpop.permute.xlu0 %1727  ;;  %v1735_v6 = vunpack.i.h.bf16 %v1733_v21  ;;  %v1734_v54 = vunpack.i.l.bf16 %v1733_v21 }
 0x520   : > { %1515 = vmatprep.subr.msk.bf16.mxu1 %vm2198_vm6, %v1355_v7  ;;  %v1730_v18 = vunpack.i.h.bf16 %v1728_v17  ;;  %v1729_v20 = vunpack.i.l.bf16 %v1728_v17 }
 0x521   : > { %1516 = vmatpush3.bf16.msk.msra.mxu1 %vm2198_vm6, %v1355_v7  ;;  %v1364_v60 = vpack.c.bf16 %v1735_v6, %v1734_v54 }
 0x522   : > { %1517 = vmatprep.subr.msk.bf16.mxu1 %vm2198_vm6, %v1358_v8  ;;  %v1361_v57 = vpack.c.bf16 %v1730_v18, %v1729_v20 }
 0x525   : > { %1518 = vmatpush3.bf16.msk.msra.mxu1 %vm2198_vm6, %v1358_v8 }
 0x526   : > { %1519 = vmatprep.subr.bf16.mxu1 %v2402_v11 }
 0x529   : > { %1520 = vmatpush3.bf16.msra.mxu1 %v2402_v11 }
 0x52a   : > { %1521 = vmatprep.subr.bf16.mxu1 %v2400_v62 }
 0x52d   : > { %1522 = vmatpush3.bf16.msra.mxu1 %v2400_v62  ;;  %v1020_v62 = vadd.s32 4294967290, %v2195_v23 }
 0x52e   : > { %1523 = vmatprep.subr.msk.bf16.mxu1 %vm2214_vm8, %v1361_v57 }
 0x52f   : > { %vm1021_vm6 = vcmp.ge.s32.totalorder %v1020_v62, 0 }
 0x530   : > { %vm1402_vm1 = vmpackc.low %vm1021_vm6, %vm1021_vm6 }
 0x531   : > { %1524 = vmatpush3.bf16.msk.msra.mxu1 %vm2214_vm8, %v1361_v57 }
 0x532   : > { %1525 = vmatprep.subr.msk.bf16.mxu1 %vm2214_vm8, %v1364_v60 }
 0x535   : > { %1526 = vmatpush3.bf16.msk.msra.mxu1 %vm2214_vm8, %v1364_v60 }
 0x536   : > { %1111 = vmatprep.subr.bf16.mxu1 %v1936_v19 }
 0x538   : > { %1528 = vmatmul.mubr.msk.bf16.vlgmr.msra.gmra.mrb[4].mxu1 %vm279_vm4, %v1793_v28  ;;  %vm1072_vm4 = vcmp.lt.s32.totalorder %v1070_v2, 128 }
 0x539   : > { %1426 = vmatprep.mubr.msk.bf16.mxu1 %vm912_vm15, %v1794_v9  ;;  %vm1420_vm8 = vmpackc.low %vm1072_vm4, %vm1072_vm4 }
 0x542   : > { %v1738_v11 = vpop.permute.xlu0 %1737 }
 0x543   : > { %v1740_v13 = vunpack.i.h.bf16 %v1738_v11  ;;  %v1739_v16 = vunpack.i.l.bf16 %v1738_v11 }
 0x545   : > { %v1403_v22 = vpack.c.bf16 %v1740_v13, %v1739_v16 }
 0x546   : > { %v1748_v42 = vpop.permute.xlu0 %1747 }
 0x547   : > { %1404 = vmatpush1.bf16.msk.msra.mxu1 %vm1402_vm1, %v1403_v22  ;;  %v1750_v27 = vunpack.i.h.bf16 %v1748_v42  ;;  %v1749_v10 = vunpack.i.l.bf16 %v1748_v42 }
 0x548   : > { %1113 = vmatprep.subr.bf16.mxu1 %v1936_v19 }
 0x549   : > { %v1409_v12 = vpack.c.bf16 %v1750_v27, %v1749_v10 }
 0x54a   : > { %v1743_v24 = vpop.permute.xlu1 %1742  ;;  %v1758_v15 = vpop.permute.xlu0 %1757 }
 0x54b   : > { %v1745_v25 = vunpack.i.h.bf16 %v1743_v24  ;;  %v1744_v26 = vunpack.i.l.bf16 %v1743_v24  ;;  %v1760_v36 = vunpack.i.h.bf16 %v1758_v15  ;;  %v1759_v37 = vunpack.i.l.bf16 %v1758_v15 }
 0x54d   : > { %v1406_v14 = vpack.c.bf16 %v1745_v25, %v1744_v26  ;;  %v1415_v33 = vpack.c.bf16 %v1760_v36, %v1759_v37 }
 0x54e   : > { %v1753_v30 = vpop.permute.xlu1 %1752  ;;  %v1768_v46 = vpop.permute.xlu0 %1767 }
 0x54f   : > { %1407 = vmatpush1.bf16.msk.msra.mxu1 %vm1402_vm1, %v1406_v14  ;;  %v1755_v32 = vunpack.i.h.bf16 %v1753_v30  ;;  %v1754_v0 = vunpack.i.l.bf16 %v1753_v30  ;;  %v1770_v34 = vunpack.i.h.bf16 %v1768_v46  ;;  %v1769_v1 = vunpack.i.l.bf16 %v1768_v46 }
 0x550   : > { %1115 = vmatprep.subr.bf16.mxu1 %v1936_v19 }
 0x551   : > { %v1412_v35 = vpack.c.bf16 %v1755_v32, %v1754_v0  ;;  %v1421_v47 = vpack.c.bf16 %v1770_v34, %v1769_v1 }
 0x552   : > { %v1763_v40 = vpop.permute.xlu1 %1762 }
 0x553   : > { %1410 = vmatpush1.bf16.msk.msra.mxu1 %vm2262_vm14, %v1409_v12  ;;  %v1765_v43 = vunpack.i.h.bf16 %v1763_v40  ;;  %v1764_v44 = vunpack.i.l.bf16 %v1763_v40 }
 0x554   : > { %1117 = vmatprep.subr.bf16.mxu1 %v1936_v19 }
 0x556   : > { %v1773_v48 = vpop.permute.xlu1 %1772 }
 0x557   : > { %1413 = vmatpush1.bf16.msk.msra.mxu1 %vm2262_vm14, %v1412_v35  ;;  %v1775_v5 = vunpack.i.h.bf16 %v1773_v48  ;;  %v1774_v23 = vunpack.i.l.bf16 %v1773_v48 }
 0x558   : > { %1119 = vmatprep.subr.bf16.mxu1 %v1936_v19 }
 0x55b   : > { %1120 = vmatpush1.bf16.msra.mxu1 %v1046_v38  ;;  %v1418_v38 = vpack.c.bf16 %v1765_v43, %v1764_v44 }
 0x55c   : > { %1121 = vmatprep.subr.bf16.mxu1 %v1936_v19 }
 0x55f   : > { %1122 = vmatpush1.bf16.msra.mxu1 %v1047_v49  ;;  %v1424_v49 = vpack.c.bf16 %v1775_v5, %v1774_v23  ;;  %v781_v3 = vpop.permute.xlu0 %780 }
 0x560   : > { %1123 = vmatprep.subr.bf16.mxu1 %v1936_v19 }
 0x563   : > { %1416 = vmatpush1.bf16.msk.msra.mxu1 %vm2275_vm0, %v1415_v33  ;;  %v793_v8 = vpop.permute.xlu0 %792 }
 0x564   : > { %1125 = vmatprep.subr.bf16.mxu1 %v1936_v19 }
 0x567   : > { %1419 = vmatpush1.bf16.msk.msra.mxu1 %vm2275_vm0, %v1418_v38  ;;  %v785_v56 = vpop.permute.xlu1 %784 }
 0x568   : > { %1127 = vmatprep.subr.bf16.mxu1 %v1936_v19  ;;  %v1170_v57 = vpop.permute.xlu0 %1169 }
 0x56b   : > { %1422 = vmatpush1.bf16.msk.msra.mxu1 %vm1420_vm8, %v1421_v47  ;;  %v789_v7 = vpop.permute.xlu1 %788 }
 0x56c   : > { %1129 = vmatprep.subr.bf16.mxu1 %v1936_v19 }
 0x56f   : > { %1425 = vmatpush1.bf16.msk.msra.mxu1 %vm1420_vm8, %v1424_v49 }
 0x570   : > { %v1166_v19 = vpop.permute.xlu1 %1165 }
 0x572   : > { %1144 = vmatmul.mubr.bf16.vlgmr.msra.gmra.mrb[8].mxu1 %v1796_v50 }
 0x573   : > { %1427 = vmatprep.mubr.msk.bf16.mxu1 %vm912_vm15, %v1797_v51 }
 0x57a   : > { %1152 = vmatmul.mubr.bf16.gmra.mrb[12].mxu1 %v1799_v53 }
 0x60b   : > { %v1529_v41 = vpop.f32.mrb[4].mxu1 }
 0x60c   : > { %v760_v55 = vpop.f32.mrb[5].mxu1  ;;  %v777_v22 = vadd.f32 %v1529_v41, %v2378_v52 }
 0x60d   : > { %v1530_v59 = vpop.f32.mrb[6].mxu1  ;;  %v775_v17 = vadd.f32 %v760_v55, %v2381_v58  ;;  %v1174_v58 = vpop.permute.xlu1 %1173 }
 0x60e   : > { %v763_v61 = vpop.f32.mrb[7].mxu1  ;;  %v778_v42 = vadd.f32 %v1530_v59, %v2385_v63  ;;  %v797_v26 = vadd.f32 %v789_v7, %v777_v22 }
 0x60f   : > { %v776_v20 = vadd.f32 %v763_v61, %v2388_v4  ;;  %v795_v60 = vadd.f32 %v781_v3, %v775_v17 }
 0x610   : > { %v798_v30 = vadd.f32 %v793_v8, %v778_v42 }
 0x611   : > { %v796_v11 = vadd.f32 %v785_v56, %v776_v20  ;;  %v1178_v52 = vpop.permute.xlu1 %1177 }
 0x645   : > { %v1145_v18 = vpop.f32.mrb[8].mxu1 }
 0x646   : > { %v1160_v21 = vadd.f32 %v1145_v18, %v2410_v29  ;;  %v1147_v6 = vpop.f32.mrb[9].mxu1 }
 0x647   : > { %v1148_v54 = vpop.f32.mrb[10].mxu1 }
 0x648   : > { %v1180_v28 = vadd.f32 %v1166_v19, %v1160_v21  ;;  %v1161_v9 = vadd.f32 %v1148_v54, %v2414_v31  ;;  %v1150_v62 = vpop.f32.mrb[11].mxu1 }
 0x64a   : > { %v1188_v13 = vadd.f32 %v1180_v28, %v795_v60  ;;  %v1181_v16 = vadd.f32 %v1170_v57, %v1161_v9 }
 0x64c   : > { %1192 = vst [vmem:[%s203_s8] sm:$0xff] %v1188_v13  ;;  %v1189_v4 = vadd.f32 %v1181_v16, %v796_v11 }
 0x64d   : > { %v1153_v29 = vpop.f32.mrb[12].mxu1 }
 0x64e   : > { %1193 = vst [vmem:[%s203_s8 + $0x8] sm:$0xff] %v1189_v4  ;;  %v1162_v24 = vadd.f32 %v1153_v29, %v2430_v39  ;;  %v1155_v25 = vpop.f32.mrb[13].mxu1 }
 0x64f   : > { %v1156_v31 = vpop.f32.mrb[14].mxu1 }
 0x650   : > { %v1182_v27 = vadd.f32 %v1174_v58, %v1162_v24  ;;  %v1163_v10 = vadd.f32 %v1156_v31, %v2434_v45  ;;  %v1158_v14 = vpop.f32.mrb[15].mxu1 }
 0x652   : > { %v1190_v12 = vadd.f32 %v1182_v27, %v797_v26  ;;  %v1183_v32 = vadd.f32 %v1178_v52, %v1163_v10 }
 0x654   : > { %1194 = vst [vmem:[%s203_s8 + $0x10] sm:$0xff] %v1190_v12  ;;  %v1191_v63 = vadd.f32 %v1183_v32, %v798_v30 }
 0x656   : > { %1195 = vst [vmem:[%s203_s8 + $0x18] sm:$0xff] %v1191_v63 }
 0x657   : > { %1871 = shalt.err (!%p1868_p7)
}
 0x658   : > { %s1872_s29 = scalar_lea.hbm %s2524_s5, 512  ;;  %s1876_s10 = scalar_lea.hbm %s2573_s3, 1024 }
 0x659   : > { %p1873_p9 = scmp.ne.s32.totalorder %s2524_s5, %s1872_s29  ;;  %p1877_p5 = scmp.lt.u32.totalorder %s2524_s5, %s2573_s3 }
 0x65a   : > { %p1878_p11 = scmp.lt.u32.totalorder %s1876_s10, %s1872_s29  ;;  %p1880_p4 = scmp.lt.u32.totalorder %s1872_s29, %s2524_s5 }
 0x65b   : > { %p1874_p1 = pnand %p1873_p9, %p2067_p12 }
 0x65c   : > { %p1879_p2 = por %p1878_p11, %p1877_p5 }
 0x65d   : > { %p1875_p0 = pneg %p1874_p1 }
 0x65e   : > { %p1881_p6 = por %p1880_p4, %p1879_p2 }
 0x660   : > { %p1882_p8 = pnand %p1881_p6, %p1875_p0 }
 0x662   : > { %1885 = shalt.err (!%p1882_p8)
}
 0x663   : > { %s1951_s20 = smov 128   ;;  %s1952_s8 = smov 8  }
 0x664   : > { %1537 = dma.vmem_to_hbm [thread:$0]  (%p2067_p12), %s2526_s4, 512, %s2524_s5, %s1197_s11, %s1951_s20, %s1951_s20, %s1952_s8  }
 0x665 PF: > { %s1225_s9 = sand.u32 1, %s1916_s12   ;;  %p2598_p10 = scmp.ne.s32.totalorder %s2578_s19, 0 }
 0x666   : > { %p2599_p13 = scmp.ge.s32.totalorder %s1928_s15, 2  ;;  %s1226_s7 = scalar_lea.sflag [#allocation4], %s1225_s9 }
 0x668   : > { %p1548_p3 = pnand %p2599_p13, %p2598_p10 }
 0x66a   : > { %1911 = dma.done.wait (!%p1548_p3), %s1226_s7, 512  }
 0x66b   : > { %1913 = vsyncadd (!%p1548_p3), %s1226_s7, 4294966784  ;;  %p17_p7 = scmp.ge.s32.totalorder %s2029_s24, 4   ;;  %s2600_s12 = smov %s1920_s13 }
 0x66c   : > { %s2601_s13 = smov %s1924_s14  ;;  %s2602_s14 = smov %s2063_s17 }
 0x66d   : > { %s2603_s15 = smov %s2029_s24  ;;  %19 = sbr.rel (!%p17_p7) target bundleno = 6 (0x6), region = 86 }
 0x674   :  { %1231 = vsyncpa [#allocation3], 1 }
 0x675   :  { %1233 = vsyncpa [#allocation3 + $0x1], 1 }
 0x676   :  { %1234 = vsyncpa [#allocation6], 1 }
 0x677   :  { %1235 = vsyncpa [#allocation4], 1 }
 0x678   :  { %1237 = vsyncpa [#allocation4 + $0x1], 1 }

</bundles_post_ra>
